<compile_context>
chip_gen: v7x
topology: tpu7x:2x2x1
jax: 0.10.0
libtpu: 0.0.40
codegen_flags: <defaults>
</compile_context>

<pallas_src>
import jax
import jax.numpy as jnp
from jax.experimental import pallas as pl
from jax.experimental.pallas import tpu as pltpu

DIM_X = 3
FILTER_SIZE = 128
LAYER_SIZE = 8            # 1 input linear + (LAYER_SIZE-1) hidden linears + 1 output linear
NUM_HIDDEN = LAYER_SIZE - 1
WO_PAD = 128              # MXU operand width for the output layer (zero-padded columns)
TILE_N_MAX = 4096         # rows (points) per grid step, upper bound
TILE_N_ALIGN = 256


def _mlp_kernel(x_ref, w0_ref, b0_ref, wh_ref, bh_ref, wo_ref, bo_ref, o_ref):
    """Full MLP forward for one tile of points, entirely in VMEM.

    x_ref : (TILE_N, DIM_X)  f32
    w0_ref: (DIM_X, FILTER_SIZE) f32        b0_ref: (1, FILTER_SIZE) f32
    wh_ref: (NUM_HIDDEN, FILTER_SIZE, FILTER_SIZE) bf16
    bh_ref: (NUM_HIDDEN, FILTER_SIZE) f32
    wo_ref: (FILTER_SIZE, WO_PAD) bf16      bo_ref: (1, WO_PAD) f32
    o_ref : (TILE_N, DIM_X) f32
    """
    x = x_ref[...]                          # (T, 3)   f32
    w0 = w0_ref[...]                        # (3, 128) f32

    # Input layer as rank-1 FMAs on the VPU (a K=3 contraction wastes a full
    # MXU pass); bias add + ReLU in f32.
    h = (x[:, 0:1] * w0[0:1, :]
         + x[:, 1:2] * w0[1:2, :]
         + x[:, 2:3] * w0[2:3, :]
         + b0_ref[...])
    h = jnp.maximum(h, 0.0)

    # Hidden layers: bf16 MXU matmuls with f32 accumulation; bias/ReLU in f32.
    for l in range(NUM_HIDDEN):
        w = wh_ref[l]                       # (128, 128) bf16
        b = bh_ref[pl.ds(l, 1), :]          # (1, 128)   f32 (static slice)
        h = jnp.dot(h.astype(jnp.bfloat16), w,
                    preferred_element_type=jnp.float32) + b
        h = jnp.maximum(h, 0.0)

    # Output layer: lane-dense MXU operand (zero-padded to WO_PAD columns),
    # then store only the DIM_X real columns -> minimal HBM writeback.
    out = jnp.dot(h.astype(jnp.bfloat16), wo_ref[...],
                  preferred_element_type=jnp.float32) + bo_ref[...]
    o_ref[...] = out[:, :DIM_X].astype(o_ref.dtype)


def _round_up(v, m):
    return ((v + m - 1) // m) * m


def _choose_tile(m_rows):
    # Keep >= 2 grid steps when possible (v7x has 2 TensorCores), tiles in
    # multiples of 256, capped so pipeline buffers + unrolled-layer temporaries
    # stay well inside the VMEM limit.
    t = _round_up(max((m_rows + 1) // 2, TILE_N_ALIGN), TILE_N_ALIGN)
    return min(t, TILE_N_MAX)


def neural_prior_forward(x, params):
    """x: [B, N, DIM_X] f32 -> [B, N, DIM_X] f32 (output_feat=False path)."""
    w0, b0, wh, bh, wo, bo = params
    B, N, D = x.shape
    assert D == DIM_X

    M = B * N
    tile_n = _choose_tile(M)
    M_pad = _round_up(M, tile_n)

    x2 = x.reshape(M, D)
    if M_pad != M:
        x2 = jnp.pad(x2, ((0, M_pad - M), (0, 0)))

    # Weight prep: bf16 MXU operands; output weights zero-padded to WO_PAD lanes.
    wh_b = wh.astype(jnp.bfloat16)
    wo_b = jnp.pad(wo, ((0, 0), (0, WO_PAD - DIM_X))).astype(jnp.bfloat16)
    bo_p = jnp.pad(bo, ((0, 0), (0, WO_PAD - DIM_X)))

    grid = (M_pad // tile_n,)

    out = pl.pallas_call(
        _mlp_kernel,
        out_shape=jax.ShapeDtypeStruct((M_pad, DIM_X), x.dtype),
        grid_spec=pltpu.PrefetchScalarGridSpec(
            num_scalar_prefetch=0,
            grid=grid,
            in_specs=[
                pl.BlockSpec((tile_n, DIM_X), lambda i: (i, 0)),                            # x tile
                pl.BlockSpec((DIM_X, FILTER_SIZE), lambda i: (0, 0)),                       # w0
                pl.BlockSpec((1, FILTER_SIZE), lambda i: (0, 0)),                           # b0
                pl.BlockSpec((NUM_HIDDEN, FILTER_SIZE, FILTER_SIZE), lambda i: (0, 0, 0)),  # wh (bf16)
                pl.BlockSpec((NUM_HIDDEN, FILTER_SIZE), lambda i: (0, 0)),                  # bh
                pl.BlockSpec((FILTER_SIZE, WO_PAD), lambda i: (0, 0)),                      # wo (padded, bf16)
                pl.BlockSpec((1, WO_PAD), lambda i: (0, 0)),                                # bo (padded)
            ],
            out_specs=pl.BlockSpec((tile_n, DIM_X), lambda i: (i, 0)),
        ),
        compiler_params=pltpu.CompilerParams(
            dimension_semantics=("parallel",),
            vmem_limit_bytes=48 * 1024 * 1024,
        ),
    )(x2, w0, b0, wh_b, bh, wo_b, bo_p)

    return out[:M, :].reshape(B, N, DIM_X)


def init_params(key):
    """Deterministic parameter init mimicking nn.Linear shapes (stored transposed:
    weights are (in, out) so the kernel does x @ W + b). All params f32; the
    wrapper handles bf16 casting / output-column padding."""
    ks = jax.random.split(key, 6)
    scale0 = 1.0 / jnp.sqrt(DIM_X)
    scaleh = 1.0 / jnp.sqrt(FILTER_SIZE)
    w0 = jax.random.uniform(ks[0], (DIM_X, FILTER_SIZE), jnp.float32, -scale0, scale0)
    b0 = jax.random.uniform(ks[1], (1, FILTER_SIZE), jnp.float32, -scale0, scale0)
    wh = jax.random.uniform(ks[2], (NUM_HIDDEN, FILTER_SIZE, FILTER_SIZE), jnp.float32,
                            -scaleh, scaleh)
    bh = jax.random.uniform(ks[3], (NUM_HIDDEN, FILTER_SIZE), jnp.float32, -scaleh, scaleh)
    wo = jax.random.uniform(ks[4], (FILTER_SIZE, DIM_X), jnp.float32, -scaleh, scaleh)
    bo = jax.random.uniform(ks[5], (1, DIM_X), jnp.float32, -scaleh, scaleh)
    return (w0, b0, wh, bh, wo, bo)


def reference_forward_f32(x, params):
    """Pure-f32 reference (module semantics)."""
    w0, b0, wh, bh, wo, bo = params
    hp = jax.lax.Precision.HIGHEST
    h = jnp.maximum(jnp.dot(x, w0, precision=hp) + b0[0], 0.0)
    for l in range(NUM_HIDDEN):
        h = jnp.maximum(jnp.dot(h, wh[l], precision=hp) + bh[l], 0.0)
    return jnp.dot(h, wo, precision=hp) + bo[0]


def reference_forward_bf16(x, params):
    """Mirrors the kernel's numerics: rank-1 f32 input layer, bf16 MXU matmuls
    with f32 accumulation, f32 bias/ReLU."""
    w0, b0, wh, bh, wo, bo = params
    h = (x[..., 0:1] * w0[0] + x[..., 1:2] * w0[1] + x[..., 2:3] * w0[2] + b0[0])
    h = jnp.maximum(h, 0.0)
    for l in range(NUM_HIDDEN):
        h = jnp.dot(h.astype(jnp.bfloat16), wh[l].astype(jnp.bfloat16),
                    preferred_element_type=jnp.float32) + bh[l]
        h = jnp.maximum(h, 0.0)
    return jnp.dot(h.astype(jnp.bfloat16), wo.astype(jnp.bfloat16),
                   preferred_element_type=jnp.float32) + bo[0]


if __name__ == "__main__":
    key = jax.random.PRNGKey(0)
    k_x, k_p = jax.random.split(key)

    B, N = 2, 200   # M=400 -> adaptive tile=256, grid=(2,): exercises padding + 2 grid steps
    x = jax.random.normal(k_x, (B, N, DIM_X), dtype=jnp.float32)
    params = init_params(k_p)

    y = jax.block_until_ready(neural_prior_forward(x, params))
    assert y.shape == (B, N, DIM_X)

    y_bf = reference_forward_bf16(x, params)
    y_f32 = reference_forward_f32(x, params)
    assert jnp.allclose(y, y_bf, atol=5e-3, rtol=5e-3), "mismatch vs bf16-emulating reference"
    assert jnp.allclose(y, y_f32, atol=5e-2, rtol=5e-2), "mismatch vs f32 reference"

    print("KERNEL_OK")
</pallas_src>

<mosaic_0001>
module attributes {stable_mosaic.version = 11 : i64} {
  func.func @_mlp_kernel(%arg0: i32, %arg1: memref<256x3xf32, #tpu.memory_space<vmem>>, %arg2: memref<3x128xf32, #tpu.memory_space<vmem>>, %arg3: memref<1x128xf32, #tpu.memory_space<vmem>>, %arg4: memref<7x128x128xbf16, #tpu.memory_space<vmem>>, %arg5: memref<7x128xf32, #tpu.memory_space<vmem>>, %arg6: memref<128x128xbf16, #tpu.memory_space<vmem>>, %arg7: memref<1x128xf32, #tpu.memory_space<vmem>>, %arg8: memref<256x3xf32, #tpu.memory_space<vmem>>) attributes {dimension_semantics = [#tpu.dimension_semantics<parallel>], iteration_bounds = array<i64: 2>, scalar_prefetch = 0 : i64, scratch_operands = 0 : i64, tpu.core_type = #tpu.core_type<tc>, window_params = [{transform_indices = @transform_0, window_bounds = array<i64: 256, 3>}, {pipeline_mode = #tpu.pipeline_mode<synchronous>, transform_indices = @transform_1, window_bounds = array<i64: 3, 128>}, {pipeline_mode = #tpu.pipeline_mode<synchronous>, transform_indices = @transform_2, window_bounds = array<i64: 1, 128>}, {pipeline_mode = #tpu.pipeline_mode<synchronous>, transform_indices = @transform_3, window_bounds = array<i64: 7, 128, 128>}, {pipeline_mode = #tpu.pipeline_mode<synchronous>, transform_indices = @transform_4, window_bounds = array<i64: 7, 128>}, {pipeline_mode = #tpu.pipeline_mode<synchronous>, transform_indices = @transform_5, window_bounds = array<i64: 128, 128>}, {pipeline_mode = #tpu.pipeline_mode<synchronous>, transform_indices = @transform_6, window_bounds = array<i64: 1, 128>}, {transform_indices = @transform_7, window_bounds = array<i64: 256, 3>}]} {
    %c0 = arith.constant 0 : index
    %c0_0 = arith.constant 0 : index
    %0 = vector.load %arg1[%c0, %c0_0] : memref<256x3xf32, #tpu.memory_space<vmem>>, vector<256x3xf32>
    %c0_1 = arith.constant 0 : index
    %c0_2 = arith.constant 0 : index
    %1 = vector.load %arg2[%c0_1, %c0_2] : memref<3x128xf32, #tpu.memory_space<vmem>>, vector<3x128xf32>
    %2 = vector.extract_strided_slice %0 {offsets = [0, 0], sizes = [256, 1], strides = [1, 1]} : vector<256x3xf32> to vector<256x1xf32>
    %3 = vector.extract_strided_slice %1 {offsets = [0, 0], sizes = [1, 128], strides = [1, 1]} : vector<3x128xf32> to vector<1x128xf32>
    %4 = vector.broadcast %2 : vector<256x1xf32> to vector<256x128xf32>
    %5 = vector.broadcast %3 : vector<1x128xf32> to vector<256x128xf32>
    %6 = arith.mulf %4, %5 : vector<256x128xf32>
    %7 = vector.extract_strided_slice %0 {offsets = [0, 1], sizes = [256, 1], strides = [1, 1]} : vector<256x3xf32> to vector<256x1xf32>
    %8 = vector.extract_strided_slice %1 {offsets = [1, 0], sizes = [1, 128], strides = [1, 1]} : vector<3x128xf32> to vector<1x128xf32>
    %9 = vector.broadcast %7 : vector<256x1xf32> to vector<256x128xf32>
    %10 = vector.broadcast %8 : vector<1x128xf32> to vector<256x128xf32>
    %11 = arith.mulf %9, %10 : vector<256x128xf32>
    %12 = arith.addf %6, %11 : vector<256x128xf32>
    %13 = vector.extract_strided_slice %0 {offsets = [0, 2], sizes = [256, 1], strides = [1, 1]} : vector<256x3xf32> to vector<256x1xf32>
    %14 = vector.extract_strided_slice %1 {offsets = [2, 0], sizes = [1, 128], strides = [1, 1]} : vector<3x128xf32> to vector<1x128xf32>
    %15 = vector.broadcast %13 : vector<256x1xf32> to vector<256x128xf32>
    %16 = vector.broadcast %14 : vector<1x128xf32> to vector<256x128xf32>
    %17 = arith.mulf %15, %16 : vector<256x128xf32>
    %18 = arith.addf %12, %17 : vector<256x128xf32>
    %c0_3 = arith.constant 0 : index
    %c0_4 = arith.constant 0 : index
    %19 = vector.load %arg3[%c0_3, %c0_4] : memref<1x128xf32, #tpu.memory_space<vmem>>, vector<1x128xf32>
    %20 = vector.broadcast %19 : vector<1x128xf32> to vector<256x128xf32>
    %21 = arith.addf %18, %20 : vector<256x128xf32>
    %cst = arith.constant 0.000000e+00 : f32
    %22 = vector.broadcast %cst : f32 to vector<256x128xf32>
    %23 = arith.maximumf %21, %22 : vector<256x128xf32>
    %c0_5 = arith.constant 0 : index
    %c0_6 = arith.constant 0 : index
    %c0_7 = arith.constant 0 : index
    %24 = vector.load %arg4[%c0_5, %c0_6, %c0_7] : memref<7x128x128xbf16, #tpu.memory_space<vmem>>, vector<1x128x128xbf16>
    %25 = vector.shape_cast %24 : vector<1x128x128xbf16> to vector<128x128xbf16>
    %c0_8 = arith.constant 0 : index
    %c0_9 = arith.constant 0 : index
    %26 = vector.load %arg5[%c0_8, %c0_9] : memref<7x128xf32, #tpu.memory_space<vmem>>, vector<1x128xf32>
    %27 = arith.truncf %23 : vector<256x128xf32> to vector<256x128xbf16>
    %cst_10 = arith.constant dense<0.000000e+00> : vector<256x128xf32>
    %28 = tpu.matmul %27, %25, %cst_10 {dimension_numbers = #tpu.dot_dimension_numbers<[1], [0], [0], [1], [0, 0, 1, 1], [], []>} : vector<256x128xbf16>, vector<128x128xbf16>, vector<256x128xf32> -> vector<256x128xf32>
    %29 = vector.broadcast %26 : vector<1x128xf32> to vector<256x128xf32>
    %30 = arith.addf %28, %29 : vector<256x128xf32>
    %cst_11 = arith.constant 0.000000e+00 : f32
    %31 = vector.broadcast %cst_11 : f32 to vector<256x128xf32>
    %32 = arith.maximumf %30, %31 : vector<256x128xf32>
    %c1 = arith.constant 1 : index
    %c0_12 = arith.constant 0 : index
    %c0_13 = arith.constant 0 : index
    %33 = vector.load %arg4[%c1, %c0_12, %c0_13] : memref<7x128x128xbf16, #tpu.memory_space<vmem>>, vector<1x128x128xbf16>
    %34 = vector.shape_cast %33 : vector<1x128x128xbf16> to vector<128x128xbf16>
    %c1_14 = arith.constant 1 : index
    %c0_15 = arith.constant 0 : index
    %35 = vector.load %arg5[%c1_14, %c0_15] : memref<7x128xf32, #tpu.memory_space<vmem>>, vector<1x128xf32>
    %36 = arith.truncf %32 : vector<256x128xf32> to vector<256x128xbf16>
    %cst_16 = arith.constant dense<0.000000e+00> : vector<256x128xf32>
    %37 = tpu.matmul %36, %34, %cst_16 {dimension_numbers = #tpu.dot_dimension_numbers<[1], [0], [0], [1], [0, 0, 1, 1], [], []>} : vector<256x128xbf16>, vector<128x128xbf16>, vector<256x128xf32> -> vector<256x128xf32>
    %38 = vector.broadcast %35 : vector<1x128xf32> to vector<256x128xf32>
    %39 = arith.addf %37, %38 : vector<256x128xf32>
    %cst_17 = arith.constant 0.000000e+00 : f32
    %40 = vector.broadcast %cst_17 : f32 to vector<256x128xf32>
    %41 = arith.maximumf %39, %40 : vector<256x128xf32>
    %c2 = arith.constant 2 : index
    %c0_18 = arith.constant 0 : index
    %c0_19 = arith.constant 0 : index
    %42 = vector.load %arg4[%c2, %c0_18, %c0_19] : memref<7x128x128xbf16, #tpu.memory_space<vmem>>, vector<1x128x128xbf16>
    %43 = vector.shape_cast %42 : vector<1x128x128xbf16> to vector<128x128xbf16>
    %c2_20 = arith.constant 2 : index
    %c0_21 = arith.constant 0 : index
    %44 = vector.load %arg5[%c2_20, %c0_21] : memref<7x128xf32, #tpu.memory_space<vmem>>, vector<1x128xf32>
    %45 = arith.truncf %41 : vector<256x128xf32> to vector<256x128xbf16>
    %cst_22 = arith.constant dense<0.000000e+00> : vector<256x128xf32>
    %46 = tpu.matmul %45, %43, %cst_22 {dimension_numbers = #tpu.dot_dimension_numbers<[1], [0], [0], [1], [0, 0, 1, 1], [], []>} : vector<256x128xbf16>, vector<128x128xbf16>, vector<256x128xf32> -> vector<256x128xf32>
    %47 = vector.broadcast %44 : vector<1x128xf32> to vector<256x128xf32>
    %48 = arith.addf %46, %47 : vector<256x128xf32>
    %cst_23 = arith.constant 0.000000e+00 : f32
    %49 = vector.broadcast %cst_23 : f32 to vector<256x128xf32>
    %50 = arith.maximumf %48, %49 : vector<256x128xf32>
    %c3 = arith.constant 3 : index
    %c0_24 = arith.constant 0 : index
    %c0_25 = arith.constant 0 : index
    %51 = vector.load %arg4[%c3, %c0_24, %c0_25] : memref<7x128x128xbf16, #tpu.memory_space<vmem>>, vector<1x128x128xbf16>
    %52 = vector.shape_cast %51 : vector<1x128x128xbf16> to vector<128x128xbf16>
    %c3_26 = arith.constant 3 : index
    %c0_27 = arith.constant 0 : index
    %53 = vector.load %arg5[%c3_26, %c0_27] : memref<7x128xf32, #tpu.memory_space<vmem>>, vector<1x128xf32>
    %54 = arith.truncf %50 : vector<256x128xf32> to vector<256x128xbf16>
    %cst_28 = arith.constant dense<0.000000e+00> : vector<256x128xf32>
    %55 = tpu.matmul %54, %52, %cst_28 {dimension_numbers = #tpu.dot_dimension_numbers<[1], [0], [0], [1], [0, 0, 1, 1], [], []>} : vector<256x128xbf16>, vector<128x128xbf16>, vector<256x128xf32> -> vector<256x128xf32>
    %56 = vector.broadcast %53 : vector<1x128xf32> to vector<256x128xf32>
    %57 = arith.addf %55, %56 : vector<256x128xf32>
    %cst_29 = arith.constant 0.000000e+00 : f32
    %58 = vector.broadcast %cst_29 : f32 to vector<256x128xf32>
    %59 = arith.maximumf %57, %58 : vector<256x128xf32>
    %c4 = arith.constant 4 : index
    %c0_30 = arith.constant 0 : index
    %c0_31 = arith.constant 0 : index
    %60 = vector.load %arg4[%c4, %c0_30, %c0_31] : memref<7x128x128xbf16, #tpu.memory_space<vmem>>, vector<1x128x128xbf16>
    %61 = vector.shape_cast %60 : vector<1x128x128xbf16> to vector<128x128xbf16>
    %c4_32 = arith.constant 4 : index
    %c0_33 = arith.constant 0 : index
    %62 = vector.load %arg5[%c4_32, %c0_33] : memref<7x128xf32, #tpu.memory_space<vmem>>, vector<1x128xf32>
    %63 = arith.truncf %59 : vector<256x128xf32> to vector<256x128xbf16>
    %cst_34 = arith.constant dense<0.000000e+00> : vector<256x128xf32>
    %64 = tpu.matmul %63, %61, %cst_34 {dimension_numbers = #tpu.dot_dimension_numbers<[1], [0], [0], [1], [0, 0, 1, 1], [], []>} : vector<256x128xbf16>, vector<128x128xbf16>, vector<256x128xf32> -> vector<256x128xf32>
    %65 = vector.broadcast %62 : vector<1x128xf32> to vector<256x128xf32>
    %66 = arith.addf %64, %65 : vector<256x128xf32>
    %cst_35 = arith.constant 0.000000e+00 : f32
    %67 = vector.broadcast %cst_35 : f32 to vector<256x128xf32>
    %68 = arith.maximumf %66, %67 : vector<256x128xf32>
    %c5 = arith.constant 5 : index
    %c0_36 = arith.constant 0 : index
    %c0_37 = arith.constant 0 : index
    %69 = vector.load %arg4[%c5, %c0_36, %c0_37] : memref<7x128x128xbf16, #tpu.memory_space<vmem>>, vector<1x128x128xbf16>
    %70 = vector.shape_cast %69 : vector<1x128x128xbf16> to vector<128x128xbf16>
    %c5_38 = arith.constant 5 : index
    %c0_39 = arith.constant 0 : index
    %71 = vector.load %arg5[%c5_38, %c0_39] : memref<7x128xf32, #tpu.memory_space<vmem>>, vector<1x128xf32>
    %72 = arith.truncf %68 : vector<256x128xf32> to vector<256x128xbf16>
    %cst_40 = arith.constant dense<0.000000e+00> : vector<256x128xf32>
    %73 = tpu.matmul %72, %70, %cst_40 {dimension_numbers = #tpu.dot_dimension_numbers<[1], [0], [0], [1], [0, 0, 1, 1], [], []>} : vector<256x128xbf16>, vector<128x128xbf16>, vector<256x128xf32> -> vector<256x128xf32>
    %74 = vector.broadcast %71 : vector<1x128xf32> to vector<256x128xf32>
    %75 = arith.addf %73, %74 : vector<256x128xf32>
    %cst_41 = arith.constant 0.000000e+00 : f32
    %76 = vector.broadcast %cst_41 : f32 to vector<256x128xf32>
    %77 = arith.maximumf %75, %76 : vector<256x128xf32>
    %c6 = arith.constant 6 : index
    %c0_42 = arith.constant 0 : index
    %c0_43 = arith.constant 0 : index
    %78 = vector.load %arg4[%c6, %c0_42, %c0_43] : memref<7x128x128xbf16, #tpu.memory_space<vmem>>, vector<1x128x128xbf16>
    %79 = vector.shape_cast %78 : vector<1x128x128xbf16> to vector<128x128xbf16>
    %c6_44 = arith.constant 6 : index
    %c0_45 = arith.constant 0 : index
    %80 = vector.load %arg5[%c6_44, %c0_45] : memref<7x128xf32, #tpu.memory_space<vmem>>, vector<1x128xf32>
    %81 = arith.truncf %77 : vector<256x128xf32> to vector<256x128xbf16>
    %cst_46 = arith.constant dense<0.000000e+00> : vector<256x128xf32>
    %82 = tpu.matmul %81, %79, %cst_46 {dimension_numbers = #tpu.dot_dimension_numbers<[1], [0], [0], [1], [0, 0, 1, 1], [], []>} : vector<256x128xbf16>, vector<128x128xbf16>, vector<256x128xf32> -> vector<256x128xf32>
    %83 = vector.broadcast %80 : vector<1x128xf32> to vector<256x128xf32>
    %84 = arith.addf %82, %83 : vector<256x128xf32>
    %cst_47 = arith.constant 0.000000e+00 : f32
    %85 = vector.broadcast %cst_47 : f32 to vector<256x128xf32>
    %86 = arith.maximumf %84, %85 : vector<256x128xf32>
    %87 = arith.truncf %86 : vector<256x128xf32> to vector<256x128xbf16>
    %c0_48 = arith.constant 0 : index
    %c0_49 = arith.constant 0 : index
    %88 = vector.load %arg6[%c0_48, %c0_49] : memref<128x128xbf16, #tpu.memory_space<vmem>>, vector<128x128xbf16>
    %cst_50 = arith.constant dense<0.000000e+00> : vector<256x128xf32>
    %89 = tpu.matmul %87, %88, %cst_50 {dimension_numbers = #tpu.dot_dimension_numbers<[1], [0], [0], [1], [0, 0, 1, 1], [], []>} : vector<256x128xbf16>, vector<128x128xbf16>, vector<256x128xf32> -> vector<256x128xf32>
    %c0_51 = arith.constant 0 : index
    %c0_52 = arith.constant 0 : index
    %90 = vector.load %arg7[%c0_51, %c0_52] : memref<1x128xf32, #tpu.memory_space<vmem>>, vector<1x128xf32>
    %91 = vector.broadcast %90 : vector<1x128xf32> to vector<256x128xf32>
    %92 = arith.addf %89, %91 : vector<256x128xf32>
    %93 = vector.extract_strided_slice %92 {offsets = [0, 0], sizes = [256, 3], strides = [1, 1]} : vector<256x128xf32> to vector<256x3xf32>
    %c0_53 = arith.constant 0 : index
    %c0_54 = arith.constant 0 : index
    %94 = vector.load %arg8[%c0_53, %c0_54] : memref<256x3xf32, #tpu.memory_space<vmem>>, vector<256x3xf32>
    tpu.vector_store %arg8[%c0_53, %c0_54], %93 {strides = array<i32>} : memref<256x3xf32, #tpu.memory_space<vmem>>, vector<256x3xf32>,
    return
  }
  func.func @transform_0(%arg0: i32) -> (i32, i32) {
    %c0_i32 = arith.constant 0 : i32
    %c0_i32_0 = arith.constant 0 : i32
    return %arg0, %c0_i32 : i32, i32
  }
  func.func @transform_1(%arg0: i32) -> (i32, i32) {
    %c0_i32 = arith.constant 0 : i32
    %c0_i32_0 = arith.constant 0 : i32
    %c0_i32_1 = arith.constant 0 : i32
    return %c0_i32, %c0_i32_0 : i32, i32
  }
  func.func @transform_2(%arg0: i32) -> (i32, i32) {
    %c0_i32 = arith.constant 0 : i32
    %c0_i32_0 = arith.constant 0 : i32
    %c0_i32_1 = arith.constant 0 : i32
    return %c0_i32, %c0_i32_0 : i32, i32
  }
  func.func @transform_3(%arg0: i32) -> (i32, i32, i32) {
    %c0_i32 = arith.constant 0 : i32
    %c0_i32_0 = arith.constant 0 : i32
    %c0_i32_1 = arith.constant 0 : i32
    %c0_i32_2 = arith.constant 0 : i32
    return %c0_i32, %c0_i32_0, %c0_i32_1 : i32, i32, i32
  }
  func.func @transform_4(%arg0: i32) -> (i32, i32) {
    %c0_i32 = arith.constant 0 : i32
    %c0_i32_0 = arith.constant 0 : i32
    %c0_i32_1 = arith.constant 0 : i32
    return %c0_i32, %c0_i32_0 : i32, i32
  }
  func.func @transform_5(%arg0: i32) -> (i32, i32) {
    %c0_i32 = arith.constant 0 : i32
    %c0_i32_0 = arith.constant 0 : i32
    %c0_i32_1 = arith.constant 0 : i32
    return %c0_i32, %c0_i32_0 : i32, i32
  }
  func.func @transform_6(%arg0: i32) -> (i32, i32) {
    %c0_i32 = arith.constant 0 : i32
    %c0_i32_0 = arith.constant 0 : i32
    %c0_i32_1 = arith.constant 0 : i32
    return %c0_i32, %c0_i32_0 : i32, i32
  }
  func.func @transform_7(%arg0: i32) -> (i32, i32) {
    %c0_i32 = arith.constant 0 : i32
    %c0_i32_0 = arith.constant 0 : i32
    return %arg0, %c0_i32 : i32, i32
  }
}

</mosaic_0001>

<bundles_post_ra>
// kernel: tpu_custom_call.1
= control target key start
LH: loop header
LB: loop body
LE: loop exit
PB: predicated region body
PF: predicated region fallthrough
CT: control target
= control target key end

     0   :  { %s4190_s24 = smov 0   ;;  %s5137_s0 = inlined_call_operand.vmem [shape: f32[512,3], index: 0, kind: input, shape index: {}]   ;;  %s5138_s1 = inlined_call_operand.vmem [shape: f32[3,128], index: 1, kind: input, shape index: {}]   ;;  %s5139_s2 = inlined_call_operand.vmem [shape: f32[1,128], index: 2, kind: input, shape index: {}]   ;;  %s5140_s3 = inlined_call_operand.vmem [shape: bf16[7,128,128], index: 3, kind: input, shape index: {}]   ;;  %s5141_s4 = inlined_call_operand.vmem [shape: f32[7,128], index: 4, kind: input, shape index: {}]   ;;  %s5142_s5 = inlined_call_operand.vmem [shape: bf16[128,128], index: 5, kind: input, shape index: {}]   ;;  %s5143_s6 = inlined_call_operand.vmem [shape: f32[1,128], index: 6, kind: input, shape index: {}]   ;;  %s5144_s7 = inlined_call_operand.vmem [shape: f32[512,3], index: 7, kind: output, shape index: {}]  }
   0x1 LB: > { %s3264_s25 = sadd.s32 4294967295, %s4145_s24   ;;  %p3268_p0 = scmp.ge.s32.totalorder %s4145_s24, 1  ;;  %s4145_s24 = sphi %s4190_s24, %s17_s24  }
   0x2   : > { %p238_p1 = scmp.lt.s32.totalorder %s4145_s24, 3 }
   0x4   : > { %p239_p2 = pnand %p3268_p0, %p238_p1 }
   0x5   : > { %s3269_s26 = sshll.u32 (!%p239_p2), %s3264_s25, 5  ;;  %v4147_v0 = vmov (!%p239_p2), 1   ;;  %v4148_v7 = vmov (!%p239_p2), 0   ;;  %v4149_v8 = vmov (!%p239_p2), 2   ;;  %v4075_v16 = vld [vmem:[%s5140_s3] sm:$0xff] (!%p239_p2)   ;;  %v4076_v19 = vld [vmem:[%s5140_s3 + $0x8] sm:$0xff] (!%p239_p2)   ;;  %v476_v60 = vlaneseq (!%p239_p2) }
   0x6   : > { %242 = sbr.rel (%p239_p2) target bundleno = 2197 (0x895), region = 48  ;;  %4033 = vset.pattern.permute.xlu0 (!%p239_p2), %v4147_v0  ;;  %4031 = vset.pattern.permute.xlu1 (!%p239_p2), %v4147_v0  ;;  %p271_p3 = scmp.lt.s32.totalorder (!%p239_p2), %s3269_s26, 63  ;;  %v4077_v20 = vld [vmem:[%s5140_s3 + $0x10] sm:$0xff] (!%p239_p2)   ;;  %v4078_v21 = vld [vmem:[%s5140_s3 + $0x18] sm:$0xff] (!%p239_p2)   ;;  %v4079_v22 = vld [vmem:[%s5140_s3 + $0x20] sm:$0xff] (!%p239_p2)   ;;  %vm3175_vm0 = vcmask (!%p239_p2), 23552  }
   0x7   : > { %3636 = vmatprep.subr.bf16.mxu0 (!%p239_p2), %v4075_v16  ;;  %v4080_v23 = vld [vmem:[%s5140_s3 + $0x28] sm:$0xff] (!%p239_p2)   ;;  %v4081_v25 = vld [vmem:[%s5140_s3 + $0x30] sm:$0xff] (!%p239_p2)   ;;  %v4082_v26 = vld [vmem:[%s5140_s3 + $0x38] sm:$0xff] (!%p239_p2)   ;;  %v477_v63 = vshrl.u32 (!%p239_p2), %v476_v60, 7 }
   0x8   : > { %3637 = vmatpush3.bf16.msra.mxu0 (!%p239_p2), %v4075_v16 }
   0x9   : > { %3638 = vmatprep.subr.bf16.mxu0 (!%p239_p2), %v4076_v19 }
   0xc   : > { %3639 = vmatpush3.bf16.msra.mxu0 (!%p239_p2), %v4076_v19 }
   0xd   : > { %s5146_s26 = smov (!%p271_p3, %s3269_s26), 63  ;;  %3640 = vmatprep.subr.bf16.mxu0 %v4077_v20 }
   0xe   : > { %s3270_s27 = sshll.u32 %s5146_s26, 3 }
   0xf   : > { %s4208_s30 = scalar_lea.vmem %s5137_s0, %s3270_s27  ;;  %s5036_s18 = scalar_lea.vmem %s5144_s7, %s3270_s27 }
  0x10   : > { %v4211_v1 = vld [vmem:[%s4208_s30 + $0x10] sm:$0xff]  ;;  %v283_v2 = vld [vmem:[%s4208_s30] sm:$0xff]  ;;  %v288_v3 = vld [vmem:[%s4208_s30 + $0x28] sm:$0xff]  ;;  %3641 = vmatpush3.bf16.msra.mxu0 %v4077_v20 }
  0x11   : > { %521 = vperm.xlu0 %4033, %v4211_v1   ;;  %513 = vperm.xlu1 %4031, %v283_v2   ;;  %v284_v4 = vld [vmem:[%s4208_s30 + $0x8] sm:$0xff]  ;;  %v289_v5 = vld [vmem:[%s4208_s30 + $0x30] sm:$0xff]  ;;  %v286_v6 = vld [vmem:[%s4208_s30 + $0x18] sm:$0xff] }
  0x12   : > { %v287_v9 = vld [vmem:[%s4208_s30 + $0x20] sm:$0xff]  ;;  %v290_v10 = vld [vmem:[%s4208_s30 + $0x38] sm:$0xff]  ;;  %v4226_v11 = vld [vmem:[%s4208_s30 + $0x48] sm:$0xff]  ;;  %3642 = vmatprep.subr.bf16.mxu0 %v4078_v21 }
  0x13   : > { %v4231_v12 = vld [vmem:[%s4208_s30 + $0x60] sm:$0xff]  ;;  %v4234_v13 = vld [vmem:[%s4208_s30 + $0x78] sm:$0xff]  ;;  %v4239_v14 = vld [vmem:[%s4208_s30 + $0x88] sm:$0xff] }
  0x14   : > { %v4245_v15 = vld [vmem:[%s4208_s30 + $0xa0] sm:$0xff]  ;;  %v4253_v17 = vld [vmem:[%s4208_s30 + $0xb8] sm:$0xff]  ;;  %v4256_v18 = vld [vmem:[%s4208_s30 + $0xc8] sm:$0xff]  ;;  %3643 = vmatpush3.bf16.msra.mxu0 %v4078_v21 }
  0x15   : > { %533 = vperm.xlu0 %4033, %v288_v3   ;;  %517 = vperm.xlu1 %4031, %v284_v4   ;;  %v291_v24 = vld [vmem:[%s4208_s30 + $0x40] sm:$0xff]  ;;  %v293_v27 = vld [vmem:[%s4208_s30 + $0x50] sm:$0xff]  ;;  %v294_v28 = vld [vmem:[%s4208_s30 + $0x58] sm:$0xff] }
  0x16   : > { %3644 = vmatprep.subr.bf16.mxu0 %v4079_v22  ;;  %v4297_v29 = vld [vmem:[%s4208_s30 + $0x90] sm:$0xff]  ;;  %v4308_v31 = vld [vmem:[%s4208_s30 + $0xe0] sm:$0xff]  ;;  %v296_v32 = vld [vmem:[%s4208_s30 + $0x68] sm:$0xff] }
  0x17   : > { %v4304_v30 = vld [vmem:[%s4208_s30 + $0xd0] sm:$0xff]  ;;  %v4322_v34 = vld [vmem:[%s4208_s30 + $0xa8] sm:$0xff]  ;;  %v299_v40 = vld [vmem:[%s4208_s30 + $0x80] sm:$0xff] }
  0x18   : > { %3645 = vmatpush3.bf16.msra.mxu0 %v4079_v22  ;;  %v297_v33 = vld [vmem:[%s4208_s30 + $0x70] sm:$0xff]  ;;  %v4342_v41 = vld [vmem:[%s4208_s30 + $0xe8] sm:$0xff]  ;;  %v302_v49 = vld [vmem:[%s4208_s30 + $0x98] sm:$0xff] }
  0x19   : > { %537 = vperm.xlu0 %4033, %v289_v5   ;;  %4032 = vset.pattern.permute.xlu1 %v4148_v7  ;;  %v4327_v35 = vld [vmem:[%s4208_s30 + $0xb0] sm:$0xff]  ;;  %v4360_v50 = vld [vmem:[%s4208_s30 + $0xf8] sm:$0xff] }
  0x1a   : > { %333 = vperm.xlu1 %4032, %v286_v6   ;;  %3646 = vmatprep.subr.bf16.mxu0 %v4080_v23  ;;  %v4349_v44 = vld [vmem:[%s4208_s30 + $0xf0] sm:$0xff] }
  0x1c   : > { %3647 = vmatpush3.bf16.msra.mxu0 %v4080_v23 }
  0x1d   : > { %4039 = vset.pattern.permute.xlu0 %v4149_v8  ;;  %3648 = vmatprep.subr.bf16.mxu0 %v4081_v25 }
  0x1e   : > { %713 = vperm.xlu0 %4039, %v284_v4   ;;  %4034 = vset.pattern.permute.xlu1 %v4147_v0 }
  0x1f   : > { %525 = vperm.xlu1 %4034, %v286_v6  }
  0x20   : > { %3649 = vmatpush3.bf16.msra.mxu0 %v4081_v25 }
  0x21   : > { %3650 = vmatprep.subr.bf16.mxu0 %v4082_v26 }
  0x22   : > { %725 = vperm.xlu0 %4039, %v287_v9  }
  0x23   : > { %4035 = vset.pattern.permute.xlu1 %v4149_v8 }
  0x24   : > { %709 = vperm.xlu1 %4035, %v283_v2   ;;  %3651 = vmatpush3.bf16.msra.mxu0 %v4082_v26 }
  0x26   : > { %737 = vperm.xlu0 %4039, %v290_v10  }
  0x28   : > { %717 = vperm.xlu1 %4035, %v4211_v1  }
  0x2a   : > { %745 = vperm.xlu0 %4039, %v4226_v11  }
  0x2c   : > { %721 = vperm.xlu1 %4035, %v286_v6   ;;  %v838_v6 = vsub.s32 2, %v477_v63 }
  0x2e   : > { %757 = vperm.xlu0 %4039, %v4231_v12  }
  0x30   : > { %4036 = vset.pattern.permute.xlu1 %v4148_v7 }
  0x31   : > { %343 = vperm.xlu1 %4036, %v288_v3  }
  0x32   : > { %769 = vperm.xlu0 %4039, %v4234_v13  }
  0x35   : > { %4037 = vset.pattern.permute.xlu1 %v4147_v0 }
  0x36   : > { %777 = vperm.xlu0 %4039, %v4239_v14   ;;  %529 = vperm.xlu1 %4037, %v287_v9  }
  0x3a   : > { %789 = vperm.xlu0 %4039, %v4245_v15   ;;  %4038 = vset.pattern.permute.xlu1 %v4148_v7 }
  0x3b   : > { %348 = vperm.xlu1 %4038, %v289_v5  }
  0x3e   : > { %801 = vperm.xlu0 %4039, %v4253_v17  }
  0x3f   : > { %353 = vperm.xlu1 %4038, %v290_v10  }
  0x42   : > { %809 = vperm.xlu0 %4039, %v4256_v18  }
  0x43   : > { %4040 = vset.pattern.permute.xlu1 %v4147_v0 }
  0x44   : > { %541 = vperm.xlu1 %4040, %v290_v10  }
  0x46   : > { %4067 = vset.pattern.permute.xlu0 %v4148_v7 }
  0x47   : > { %318 = vperm.xlu0 %4067, %v283_v2  }
  0x48   : > { %4041 = vset.pattern.permute.xlu1 %v4149_v8 }
  0x49   : > { %729 = vperm.xlu1 %4041, %v288_v3   ;;  %v642_v3 = vsub.s32 1, %v477_v63 }
  0x4b   : > { %323 = vperm.xlu0 %4067, %v284_v4   ;;  %v315_v4 = vld [vmem:[%s5138_s1] sm:$0x7] }
  0x4c   : > { %v4394_v10 = vrot.slane %v315_v4, %v642_v3 }
  0x4d   : > { %733 = vperm.xlu1 %4041, %v289_v5   ;;  %v478_v5 = vsub.s32 0, %v477_v63 }
  0x4f   : > { %328 = vperm.xlu0 %4067, %v4211_v1  }
  0x51   : > { %4042 = vset.pattern.permute.xlu1 %v4148_v7 }
  0x52   : > { %358 = vperm.xlu1 %4042, %v291_v24  }
  0x53   : > { %338 = vperm.xlu0 %4067, %v287_v9  }
  0x56   : > { %4043 = vset.pattern.permute.xlu1 %v4147_v0 }
  0x57   : > { %363 = vperm.xlu0 %4067, %v4226_v11   ;;  %545 = vperm.xlu1 %4043, %v291_v24  }
  0x5b   : > { %368 = vperm.xlu0 %4067, %v293_v27   ;;  %549 = vperm.xlu1 %4043, %v4226_v11  }
  0x5f   : > { %378 = vperm.xlu0 %4067, %v4231_v12   ;;  %4044 = vset.pattern.permute.xlu1 %v4148_v7 }
  0x60   : > { %373 = vperm.xlu1 %4044, %v294_v28  }
  0x63   : > { %403 = vperm.xlu0 %4067, %v4239_v14  }
  0x64   : > { %4045 = vset.pattern.permute.xlu1 %v4147_v0 }
  0x65   : > { %557 = vperm.xlu1 %4045, %v294_v28  }
  0x67   : > { %408 = vperm.xlu0 %4067, %v4297_v29  }
  0x69   : > { %4046 = vset.pattern.permute.xlu1 %v4149_v8 }
  0x6a   : > { %741 = vperm.xlu1 %4046, %v291_v24  }
  0x6b   : > { %418 = vperm.xlu0 %4067, %v4245_v15  }
  0x6e   : > { %749 = vperm.xlu1 %4046, %v293_v27  }
  0x6f   : > { %443 = vperm.xlu0 %4067, %v4256_v18  }
  0x72   : > { %753 = vperm.xlu1 %4046, %v294_v28  }
  0x73   : > { %448 = vperm.xlu0 %4067, %v4304_v30  }
  0x76   : > { %4047 = vset.pattern.permute.xlu1 %v4148_v7 }
  0x77   : > { %458 = vperm.xlu0 %4067, %v4308_v31   ;;  %383 = vperm.xlu1 %4047, %v296_v32  }
  0x7b   : > { %4068 = vset.pattern.permute.xlu0 %v4147_v0  ;;  %4048 = vset.pattern.permute.xlu1 %v4147_v0 }
  0x7c   : > { %553 = vperm.xlu0 %4068, %v293_v27   ;;  %561 = vperm.xlu1 %4048, %v4231_v12   ;;  %v4396_v12 = vrot.slane %v315_v4, %v478_v5 }
  0x80   : > { %565 = vperm.xlu0 %4068, %v296_v32   ;;  %4049 = vset.pattern.permute.xlu1 %v4148_v7 }
  0x81   : > { %388 = vperm.xlu1 %4049, %v297_v33  }
  0x84   : > { %569 = vperm.xlu0 %4068, %v297_v33  }
  0x85   : > { %393 = vperm.xlu1 %4049, %v4234_v13  }
  0x88   : > { %585 = vperm.xlu0 %4068, %v4297_v29  }
  0x89   : > { %4050 = vset.pattern.permute.xlu1 %v4147_v0 }
  0x8a   : > { %573 = vperm.xlu1 %4050, %v4234_v13   ;;  %v4398_v13 = vrot.slane %v315_v4, %v838_v6 }
  0x8c   : > { %597 = vperm.xlu0 %4068, %v4322_v34  }
  0x8e   : > { %4051 = vset.pattern.permute.xlu1 %v4149_v8 }
  0x8f   : > { %761 = vperm.xlu1 %4051, %v296_v32  }
  0x90   : > { %v4330_v36 = vpop.permute.xlu1 %513  ;;  %v4332_v37 = vpop.permute.xlu0 %521  ;;  %601 = vperm.xlu0 %4068, %v4327_v35  }
  0x91   : > { %v644_v16 = vmul.f32 %v4394_v10, %v4330_v36 }
  0x93   : > { %765 = vperm.xlu1 %4051, %v297_v33  }
  0x94   : > { %v4335_v38 = vpop.permute.xlu1 %517  ;;  %v4337_v39 = vpop.permute.xlu0 %533  ;;  %617 = vperm.xlu0 %4068, %v4304_v30  }
  0x95   : > { %v645_v25 = vmul.f32 %v4394_v10, %v4335_v38  ;;  %v649_v33 = vmul.f32 %v4394_v10, %v4337_v39 }
  0x97   : > { %4052 = vset.pattern.permute.xlu1 %v4148_v7 }
  0x98   : > { %398 = vperm.xlu1 %4052, %v299_v40   ;;  %v4345_v42 = vpop.permute.xlu0 %537  ;;  %629 = vperm.xlu0 %4068, %v4342_v41  }
  0x99   : > { %v334_v43 = vpop.permute.xlu1 %333 }
  0x9a   : > { %v483_v21 = vmul.f32 %v4396_v12, %v334_v43  ;;  %v646_v43 = vmul.f32 %v4394_v10, %v4332_v37 }
  0x9c   : > { %4053 = vset.pattern.permute.xlu1 %v4147_v0  ;;  %633 = vperm.xlu0 %4068, %v4349_v44  }
  0x9d   : > { %577 = vperm.xlu1 %4053, %v299_v40   ;;  %v714_v45 = vpop.permute.xlu0 %713 }
  0x9e   : > { %v526_v46 = vpop.permute.xlu1 %525  ;;  %v841_v27 = vmul.f32 %v4398_v13, %v714_v45  ;;  %v650_v45 = vmul.f32 %v4394_v10, %v4345_v42 }
  0x9f   : > { %v647_v19 = vmul.f32 %v4394_v10, %v526_v46 }
  0xa0   : > { %4073 = vset.pattern.permute.xlu0 %v4149_v8 }
  0xa1   : > { %581 = vperm.xlu1 %4053, %v4239_v14   ;;  %v4355_v47 = vpop.permute.xlu0 %725  ;;  %821 = vperm.xlu0 %4073, %v4308_v31   ;;  %v679_v28 = vadd.f32 %v647_v19, %v483_v21 }
  0xa2   : > { %v844_v37 = vmul.f32 %v4398_v13, %v4355_v47 }
  0xa3   : > { %v710_v48 = vpop.permute.xlu1 %709 }
  0xa4   : > { %v840_v22 = vmul.f32 %v4398_v13, %v710_v48  ;;  %v4424_v48 = vld [vmem:[%s5139_s2] ss:$0 sm:$0xff] }
  0xa5   : > { %4054 = vset.pattern.permute.xlu1 %v4148_v7  ;;  %v4363_v51 = vpop.permute.xlu0 %737  ;;  %833 = vperm.xlu0 %4073, %v4360_v50  }
  0xa6   : > { %413 = vperm.xlu1 %4054, %v302_v49   ;;  %v847_v3 = vmul.f32 %v4398_v13, %v4363_v51 }
  0xa7   : > { %v4366_v52 = vpop.permute.xlu1 %717 }
  0xa9   : > { %v4368_v53 = vpop.permute.xlu0 %745 }
  0xaa   : > { %4055 = vset.pattern.permute.xlu1 %v4147_v0 }
  0xab   : > { %589 = vperm.xlu1 %4055, %v302_v49   ;;  %v722_v54 = vpop.permute.xlu1 %721 }
  0xac   : > { %v843_v23 = vmul.f32 %v4398_v13, %v722_v54 }
  0xad   : > { %v4371_v55 = vpop.permute.xlu0 %757 }
  0xae   : > { %v875_v46 = vadd.f32 %v843_v23, %v679_v28 }
  0xaf   : > { %4056 = vset.pattern.permute.xlu1 %v4149_v8 }
  0xb0   : > { %773 = vperm.xlu1 %4056, %v299_v40   ;;  %v344_v56 = vpop.permute.xlu1 %343  ;;  %v914_v47 = vadd.f32 %v4424_v48, %v875_v46 }
  0xb1   : > { %v4374_v57 = vpop.permute.xlu0 %769  ;;  %v485_v36 = vmul.f32 %v4396_v12, %v344_v56 }
  0xb2   : > { %v946_v28 = vmax.f32 %v914_v47, 0.0 }
  0xb3   : > { %v681_v4 = vadd.f32 %v649_v33, %v485_v36 }
  0xb4   : > { %781 = vperm.xlu1 %4056, %v4297_v29  }
  0xb5   : > { %v4377_v58 = vpop.permute.xlu1 %529  ;;  %v4379_v59 = vpop.permute.xlu0 %777 }
  0xb6   : > { %v648_v19 = vmul.f32 %v4394_v10, %v4377_v58 }
  0xb8   : > { %785 = vperm.xlu1 %4056, %v302_v49  }
  0xb9   : > { %v4381_v61 = vpop.permute.xlu0 %789 }
  0xba   : > { %v349_v62 = vpop.permute.xlu1 %348 }
  0xbb   : > { %v486_v49 = vmul.f32 %v4396_v12, %v349_v62  ;;  %v842_v62 = vmul.f32 %v4398_v13, %v4366_v52 }
  0xbc   : > { %4057 = vset.pattern.permute.xlu1 %v4148_v7 }
  0xbd   : > { %423 = vperm.xlu1 %4057, %v4322_v34   ;;  %v4385_v1 = vpop.permute.xlu0 %801  ;;  %v682_v51 = vadd.f32 %v650_v45, %v486_v49  ;;  %v307_v49 = vld [vmem:[%s4208_s30 + $0xc0] sm:$0xff] }
  0xbe   : > { %v354_v2 = vpop.permute.xlu1 %353 }
  0xbf   : > { %v487_v5 = vmul.f32 %v4396_v12, %v354_v2 }
  0xc1   : > { %4058 = vset.pattern.permute.xlu1 %v4147_v0  ;;  %v4391_v9 = vpop.permute.xlu0 %809 }
  0xc2   : > { %593 = vperm.xlu1 %4058, %v4245_v15  }
  0xc3   : > { %v542_v11 = vpop.permute.xlu1 %541 }
  0xc4   : > { %v651_v39 = vmul.f32 %v4394_v10, %v542_v11 }
  0xc6   : > { %v319_v14 = vpop.permute.xlu0 %318  ;;  %4059 = vset.pattern.permute.xlu1 %v4148_v7 }
  0xc7   : > { %v480_v20 = vmul.f32 %v4396_v12, %v319_v14  ;;  %428 = vperm.xlu1 %4059, %v4327_v35  }
  0xc8   : > { %v730_v15 = vpop.permute.xlu1 %729 }
  0xc9   : > { %v676_v24 = vadd.f32 %v644_v16, %v480_v20  ;;  %v845_v54 = vmul.f32 %v4398_v13, %v730_v15  ;;  %v683_v20 = vadd.f32 %v651_v39, %v487_v5  ;;  %v849_v5 = vmul.f32 %v4398_v13, %v4368_v53 }
  0xca   : > { %v324_v26 = vpop.permute.xlu0 %323 }
  0xcb   : > { %v481_v29 = vmul.f32 %v4396_v12, %v324_v26  ;;  %433 = vperm.xlu1 %4059, %v4253_v17   ;;  %v872_v32 = vadd.f32 %v840_v22, %v676_v24  ;;  %v877_v15 = vadd.f32 %v845_v54, %v681_v4 }
  0xcc   : > { %v734_v40 = vpop.permute.xlu1 %733 }
  0xcd   : > { %v677_v38 = vadd.f32 %v645_v25, %v481_v29  ;;  %v911_v63 = vadd.f32 %v4424_v48, %v872_v32  ;;  %v846_v6 = vmul.f32 %v4398_v13, %v734_v40  ;;  %v879_v29 = vadd.f32 %v847_v3, %v683_v20 }
  0xce   : > { %v329_v56 = vpop.permute.xlu0 %328  ;;  %v916_v32 = vadd.f32 %v4424_v48, %v877_v15  ;;  %v310_v15 = vld [vmem:[%s4208_s30 + $0xd8] sm:$0xff] }
  0xcf   : > { %v482_v60 = vmul.f32 %v4396_v12, %v329_v56  ;;  %4060 = vset.pattern.permute.xlu1 %v4147_v0  ;;  %v873_v42 = vadd.f32 %v841_v27, %v677_v38  ;;  %v943_v22 = vmax.f32 %v911_v63, 0.0  ;;  %v878_v23 = vadd.f32 %v846_v6, %v682_v51 }
  0xd0   : > { %605 = vperm.xlu1 %4060, %v4253_v17   ;;  %v948_v45 = vmax.f32 %v916_v32, 0.0  ;;  %v918_v54 = vadd.f32 %v4424_v48, %v879_v29 }
  0xd1   : > { %v678_v11 = vadd.f32 %v646_v43, %v482_v60  ;;  %v359_v14 = vpop.permute.xlu1 %358  ;;  %v912_v16 = vadd.f32 %v4424_v48, %v873_v42  ;;  %v917_v40 = vadd.f32 %v4424_v48, %v878_v23 }
  0xd2   : > { %v339_v52 = vpop.permute.xlu0 %338  ;;  %v950_v42 = vmax.f32 %v918_v54, 0.0 }
  0xd3   : > { %v874_v21 = vadd.f32 %v842_v62, %v678_v11  ;;  %v484_v2 = vmul.f32 %v4396_v12, %v339_v52  ;;  %v944_v17 = vmax.f32 %v912_v16, 0.0  ;;  %v949_v56 = vmax.f32 %v917_v40, 0.0 }
  0xd4   : > { %4061 = vset.pattern.permute.xlu1 %v4149_v8 }
  0xd5   : > { %v680_v24 = vadd.f32 %v648_v19, %v484_v2  ;;  %793 = vperm.xlu1 %4061, %v4322_v34   ;;  %v992_v25 = vpack.c.bf16 %v944_v17, %v943_v22  ;;  %v913_v26 = vadd.f32 %v4424_v48, %v874_v21  ;;  %v995_v62 = vpack.c.bf16 %v950_v42, %v949_v56 }
  0xd6   : > { %v546_v27 = vpop.permute.xlu1 %545  ;;  %v364_v58 = vpop.permute.xlu0 %363  ;;  %v488_v19 = vmul.f32 %v4396_v12, %v359_v14 }
  0xd7   : > { %v876_v33 = vadd.f32 %v844_v37, %v680_v24  ;;  %3652 = vmatprep.mubr.bf16.mxu0 %v992_v25  ;;  %v945_v36 = vmax.f32 %v913_v26, 0.0  ;;  %v489_v63 = vmul.f32 %v4396_v12, %v364_v58  ;;  %v652_v11 = vmul.f32 %v4394_v10, %v546_v27 }
  0xd9   : > { %797 = vperm.xlu1 %4061, %v4327_v35   ;;  %v993_v43 = vpack.c.bf16 %v946_v28, %v945_v36  ;;  %v915_v34 = vadd.f32 %v4424_v48, %v876_v33  ;;  %v684_v52 = vadd.f32 %v652_v11, %v488_v19 }
  0xda   : > { %v550_v46 = vpop.permute.xlu1 %549  ;;  %v369_v38 = vpop.permute.xlu0 %368 }
  0xdb   : > { %3653 = vmatmul.mubr.bf16.vlgmr.msra.gmra.mrb[0].mxu0 %v993_v43  ;;  %v947_v39 = vmax.f32 %v915_v34, 0.0  ;;  %v653_v3 = vmul.f32 %v4394_v10, %v550_v46  ;;  %v490_v36 = vmul.f32 %v4396_v12, %v369_v38 }
  0xdd   : > { %4062 = vset.pattern.permute.xlu1 %v4148_v7  ;;  %v994_v37 = vpack.c.bf16 %v948_v45, %v947_v39  ;;  %v685_v47 = vadd.f32 %v653_v3, %v489_v63 }
  0xde   : > { %438 = vperm.xlu1 %4062, %v307_v49   ;;  %v4456_v60 = vpop.permute.xlu0 %378 }
  0xdf   : > { %3656 = vmatprep.mubr.bf16.mxu0 %v994_v37  ;;  %v374_v35 = vpop.permute.xlu1 %373  ;;  %v881_v51 = vadd.f32 %v849_v5, %v685_v47  ;;  %v492_v63 = vmul.f32 %v4396_v12, %v4456_v60  ;;  %v852_v47 = vmul.f32 %v4398_v13, %v4371_v55 }
  0xe0   : > { %v491_v32 = vmul.f32 %v4396_v12, %v374_v35 }
  0xe1   : > { %v920_v22 = vadd.f32 %v4424_v48, %v881_v51 }
  0xe2   : > { %4063 = vset.pattern.permute.xlu1 %v4147_v0  ;;  %v4461_v4 = vpop.permute.xlu0 %403 }
  0xe3   : > { %609 = vperm.xlu1 %4063, %v307_v49   ;;  %3657 = vmatmul.mubr.bf16.gmra.mrb[4].mxu0 %v995_v62  ;;  %v952_v24 = vmax.f32 %v920_v22, 0.0 }
  0xe4   : > { %v558_v6 = vpop.permute.xlu1 %557 }
  0xe5   : > { %v655_v58 = vmul.f32 %v4394_v10, %v558_v6 }
  0xe6   : > { %v4466_v16 = vpop.permute.xlu0 %408 }
  0xe7   : > { %613 = vperm.xlu1 %4063, %v4256_v18   ;;  %v687_v40 = vadd.f32 %v655_v58, %v491_v32 }
  0xe9   : > { %v742_v20 = vpop.permute.xlu1 %741 }
  0xea   : > { %v848_v21 = vmul.f32 %v4398_v13, %v742_v20  ;;  %v4472_v2 = vpop.permute.xlu0 %418 }
  0xeb   : > { %4064 = vset.pattern.permute.xlu1 %v4148_v7 }
  0xec   : > { %v880_v53 = vadd.f32 %v848_v21, %v684_v52  ;;  %453 = vperm.xlu1 %4064, %v310_v15  }
  0xed   : > { %v750_v17 = vpop.permute.xlu1 %749 }
  0xee   : > { %v919_v23 = vadd.f32 %v4424_v48, %v880_v53  ;;  %v4477_v18 = vpop.permute.xlu0 %443  ;;  %v850_v39 = vmul.f32 %v4398_v13, %v750_v17 }
  0xf0   : > { %v951_v14 = vmax.f32 %v919_v23, 0.0  ;;  %4065 = vset.pattern.permute.xlu1 %v4147_v0 }
  0xf1   : > { %621 = vperm.xlu1 %4065, %v310_v15   ;;  %v754_v25 = vpop.permute.xlu1 %753 }
  0xf2   : > { %v4480_v26 = vpop.permute.xlu0 %448  ;;  %v996_v27 = vpack.c.bf16 %v952_v24, %v951_v14  ;;  %v851_v33 = vmul.f32 %v4398_v13, %v754_v25 }
  0xf4   : > { %3660 = vmatprep.mubr.bf16.mxu0 %v996_v27  ;;  %v883_v46 = vadd.f32 %v851_v33, %v687_v40 }
  0xf5   : > { %4066 = vset.pattern.permute.xlu1 %v4149_v8 }
  0xf6   : > { %805 = vperm.xlu1 %4066, %v307_v49   ;;  %v384_v28 = vpop.permute.xlu1 %383  ;;  %v4484_v29 = vpop.permute.xlu0 %458  ;;  %v922_v54 = vadd.f32 %v4424_v48, %v883_v46  ;;  %v4083_v46 = vld [vmem:[%s5140_s3 + $0x40] sm:$0xff]  }
  0xf7   : > { %3684 = vmatprep.subr.bf16.mxu1 %v4083_v46 }
  0xf8   : > { %3685 = vmatpush3.bf16.msra.mxu1 %v4083_v46  ;;  %v860_v46 = vmul.f32 %v4398_v13, %v4381_v61 }
  0xfa   : > { %813 = vperm.xlu1 %4066, %v4304_v30   ;;  %v954_v30 = vmax.f32 %v922_v54, 0.0  ;;  %v497_v54 = vmul.f32 %v4396_v12, %v4461_v4  ;;  %v4086_v4 = vld [vmem:[%s5140_s3 + $0x58] sm:$0xff]  }
  0xfb   : > { %v554_v43 = vpop.permute.xlu0 %553  ;;  %v562_v34 = vpop.permute.xlu1 %561 }
  0xfc   : > { %v654_v45 = vmul.f32 %v4394_v10, %v554_v43  ;;  %v656_v3 = vmul.f32 %v4394_v10, %v562_v34 }
  0xfe   : > { %v686_v49 = vadd.f32 %v654_v45, %v490_v36  ;;  %817 = vperm.xlu1 %4066, %v310_v15   ;;  %v688_v6 = vadd.f32 %v656_v3, %v492_v63  ;;  %v855_v15 = vmul.f32 %v4398_v13, %v4374_v57 }
  0xff   : > { %v566_v62 = vpop.permute.xlu0 %565 }
 0x100   : > { %v882_v56 = vadd.f32 %v850_v39, %v686_v49  ;;  %v389_v37 = vpop.permute.xlu1 %388  ;;  %v657_v51 = vmul.f32 %v4394_v10, %v566_v62  ;;  %v884_v52 = vadd.f32 %v852_v47, %v688_v6  ;;  %v498_v62 = vmul.f32 %v4396_v12, %v4466_v16 }
 0x101   : > { %v494_v23 = vmul.f32 %v4396_v12, %v389_v37  ;;  %v857_v37 = vmul.f32 %v4398_v13, %v4379_v59 }
 0x102   : > { %4069 = vset.pattern.permute.xlu1 %v4148_v7  ;;  %v921_v38 = vadd.f32 %v4424_v48, %v882_v56 }
 0x103   : > { %463 = vperm.xlu1 %4069, %v4342_v41   ;;  %v570_v20 = vpop.permute.xlu0 %569 }
 0x104   : > { %v394_v35 = vpop.permute.xlu1 %393  ;;  %v953_v42 = vmax.f32 %v921_v38, 0.0  ;;  %v658_v22 = vmul.f32 %v4394_v10, %v570_v20 }
 0x105   : > { %v495_v60 = vmul.f32 %v4396_v12, %v394_v35  ;;  %v4087_v35 = vld [vmem:[%s5140_s3 + $0x60] sm:$0xff]  }
 0x106   : > { %v997_v5 = vpack.c.bf16 %v954_v30, %v953_v42  ;;  %v690_v25 = vadd.f32 %v658_v22, %v494_v23  ;;  %v4088_v42 = vld [vmem:[%s5140_s3 + $0x68] sm:$0xff]  }
 0x107   : > { %4070 = vset.pattern.permute.xlu1 %v4147_v0  ;;  %v586_v59 = vpop.permute.xlu0 %585 }
 0x108   : > { %625 = vperm.xlu1 %4070, %v4308_v31   ;;  %3661 = vmatmul.mubr.bf16.gmra.mrb[8].mxu0 %v997_v5  ;;  %v493_v31 = vmul.f32 %v4396_v12, %v384_v28  ;;  %v662_v47 = vmul.f32 %v4394_v10, %v586_v59 }
 0x109   : > { %v574_v11 = vpop.permute.xlu1 %573 }
 0x10a   : > { %v659_v19 = vmul.f32 %v4394_v10, %v574_v11  ;;  %v689_v53 = vadd.f32 %v657_v51, %v493_v31  ;;  %v4089_v51 = vld [vmem:[%s5140_s3 + $0x70] sm:$0xff]   ;;  %v694_v20 = vadd.f32 %v662_v47, %v498_v62 }
 0x10c   : > { %4071 = vset.pattern.permute.xlu1 %v4148_v7  ;;  %v691_v21 = vadd.f32 %v659_v19, %v495_v60  ;;  %v923_v7 = vadd.f32 %v4424_v48, %v884_v52 }
 0x10d   : > { %468 = vperm.xlu1 %4071, %v4349_v44  }
 0x10e   : > { %v762_v55 = vpop.permute.xlu1 %761  ;;  %v887_v14 = vadd.f32 %v855_v15, %v691_v21  ;;  %v955_v33 = vmax.f32 %v923_v7, 0.0 }
 0x10f   : > { %v853_v17 = vmul.f32 %v4398_v13, %v762_v55  ;;  %v4090_v55 = vld [vmem:[%s5140_s3 + $0x78] sm:$0xff]  }
 0x110   : > { %v926_v36 = vadd.f32 %v4424_v48, %v887_v14 }
 0x111   : > { %v885_v24 = vadd.f32 %v853_v17, %v689_v53  ;;  %473 = vperm.xlu1 %4071, %v4360_v50  }
 0x112   : > { %v766_v57 = vpop.permute.xlu1 %765  ;;  %v958_v39 = vmax.f32 %v926_v36, 0.0 }
 0x113   : > { %v924_v27 = vadd.f32 %v4424_v48, %v885_v24  ;;  %v854_v58 = vmul.f32 %v4398_v13, %v766_v57 }
 0x115   : > { %v956_v28 = vmax.f32 %v924_v27, 0.0  ;;  %v886_v32 = vadd.f32 %v854_v58, %v690_v25  ;;  %4072 = vset.pattern.permute.xlu1 %v4147_v0 }
 0x116   : > { %637 = vperm.xlu1 %4072, %v4360_v50   ;;  %v4084_v50 = vld [vmem:[%s5140_s3 + $0x48] sm:$0xff]  }
 0x117   : > { %v925_v40 = vadd.f32 %v4424_v48, %v886_v32  ;;  %v399_v43 = vpop.permute.xlu1 %398  ;;  %v998_v34 = vpack.c.bf16 %v956_v28, %v955_v33  ;;  %3686 = vmatprep.subr.bf16.mxu1 %v4084_v50 }
 0x118   : > { %3687 = vmatpush3.bf16.msra.mxu1 %v4084_v50  ;;  %v496_v5 = vmul.f32 %v4396_v12, %v399_v43  ;;  %v500_v43 = vmul.f32 %v4396_v12, %v4472_v2  ;;  %v598_v50 = vpop.permute.xlu0 %597 }
 0x119   : > { %v957_v45 = vmax.f32 %v925_v40, 0.0  ;;  %3664 = vmatprep.mubr.bf16.mxu0 %v998_v34 }
 0x11a   : > { %4074 = vset.pattern.permute.xlu1 %v4149_v8  ;;  %v4085_v8 = vld [vmem:[%s5140_s3 + $0x50] sm:$0xff]  }
 0x11b   : > { %825 = vperm.xlu1 %4074, %v4342_v41   ;;  %v999_v0 = vpack.c.bf16 %v958_v39, %v957_v45  ;;  %3688 = vmatprep.subr.bf16.mxu1 %v4085_v8 }
 0x11c   : > { %v578_v49 = vpop.permute.xlu1 %577  ;;  %3689 = vmatpush3.bf16.msra.mxu1 %v4085_v8  ;;  %v665_v8 = vmul.f32 %v4394_v10, %v598_v50 }
 0x11d   : > { %3665 = vmatmul.mubr.bf16.gmra.mrb[12].mxu0 %v999_v0  ;;  %3690 = vmatprep.subr.bf16.mxu1 %v4086_v4  ;;  %v660_v3 = vmul.f32 %v4394_v10, %v578_v49 }
 0x11f   : > { %829 = vperm.xlu1 %4074, %v4349_v44   ;;  %v692_v11 = vadd.f32 %v660_v3, %v496_v5 }
 0x120   : > { %v582_v56 = vpop.permute.xlu1 %581  ;;  %3691 = vmatpush3.bf16.msra.mxu1 %v4086_v4  ;;  %v602_v4 = vpop.permute.xlu0 %601 }
 0x121   : > { %v661_v41 = vmul.f32 %v4394_v10, %v582_v56  ;;  %3692 = vmatprep.subr.bf16.mxu1 %v4087_v35 }
 0x123   : > { %v693_v38 = vadd.f32 %v661_v41, %v497_v54 }
 0x124   : > { %3693 = vmatpush3.bf16.msra.mxu1 %v4087_v35 }
 0x125   : > { %v889_v30 = vadd.f32 %v857_v37, %v693_v38  ;;  %v414_v44 = vpop.permute.xlu1 %413  ;;  %3694 = vmatprep.subr.bf16.mxu1 %v4088_v42  ;;  %v863_v38 = vmul.f32 %v4398_v13, %v4385_v1 }
 0x126   : > { %v499_v53 = vmul.f32 %v4396_v12, %v414_v44 }
 0x127   : > { %v928_v15 = vadd.f32 %v4424_v48, %v889_v30  ;;  %v666_v30 = vmul.f32 %v4394_v10, %v602_v4 }
 0x128   : > { %3695 = vmatpush3.bf16.msra.mxu1 %v4088_v42 }
 0x129   : > { %3696 = vmatprep.subr.bf16.mxu1 %v4089_v51  ;;  %v960_v23 = vmax.f32 %v928_v15, 0.0 }
 0x12a   : > { %v590_v63 = vpop.permute.xlu1 %589 }
 0x12b   : > { %v663_v16 = vmul.f32 %v4394_v10, %v590_v63 }
 0x12c   : > { %3697 = vmatpush3.bf16.msra.mxu1 %v4089_v51 }
 0x12d   : > { %3698 = vmatprep.subr.bf16.mxu1 %v4090_v55  ;;  %v695_v24 = vadd.f32 %v663_v16, %v499_v53  ;;  %v505_v53 = vmul.f32 %v4396_v12, %v4477_v18 }
 0x12f   : > { %v774_v6 = vpop.permute.xlu1 %773 }
 0x130   : > { %v856_v19 = vmul.f32 %v4398_v13, %v774_v6  ;;  %3699 = vmatpush3.bf16.msra.mxu1 %v4090_v55 }
 0x132   : > { %v888_v60 = vadd.f32 %v856_v19, %v692_v11 }
 0x133   : > { %v782_v31 = vpop.permute.xlu1 %781 }
 0x134   : > { %v927_v52 = vadd.f32 %v4424_v48, %v888_v60  ;;  %v858_v21 = vmul.f32 %v4398_v13, %v782_v31 }
 0x136   : > { %v959_v22 = vmax.f32 %v927_v52, 0.0  ;;  %v890_v17 = vadd.f32 %v858_v21, %v694_v20 }
 0x137   : > { %v786_v14 = vpop.permute.xlu1 %785 }
 0x138   : > { %v859_v7 = vmul.f32 %v4398_v13, %v786_v14  ;;  %v1000_v57 = vpack.c.bf16 %v960_v23, %v959_v22  ;;  %v929_v25 = vadd.f32 %v4424_v48, %v890_v17  ;;  %v865_v17 = vmul.f32 %v4398_v13, %v4391_v9 }
 0x13a   : > { %v891_v27 = vadd.f32 %v859_v7, %v695_v24  ;;  %3668 = vmatprep.mubr.bf16.mxu0 %v1000_v57  ;;  %v961_v32 = vmax.f32 %v929_v25, 0.0  ;;  %v618_v25 = vpop.permute.xlu0 %617 }
 0x13b   : > { %v670_v18 = vmul.f32 %v4394_v10, %v618_v25 }
 0x13c   : > { %v930_v58 = vadd.f32 %v4424_v48, %v891_v27  ;;  %v424_v28 = vpop.permute.xlu1 %423 }
 0x13d   : > { %v501_v41 = vmul.f32 %v4396_v12, %v424_v28  ;;  %v506_v28 = vmul.f32 %v4396_v12, %v4480_v26 }
 0x13e   : > { %v962_v33 = vmax.f32 %v930_v58, 0.0 }
 0x13f   : > { %v697_v44 = vadd.f32 %v665_v8, %v501_v41 }
 0x140   : > { %v1001_v36 = vpack.c.bf16 %v962_v33, %v961_v32 }
 0x141   : > { %v594_v40 = vpop.permute.xlu1 %593 }
 0x142   : > { %v664_v34 = vmul.f32 %v4394_v10, %v594_v40  ;;  %3669 = vmatmul.mubr.bf16.gmra.mrb[16].mxu0 %v1001_v36 }
 0x144   : > { %v696_v45 = vadd.f32 %v664_v34, %v500_v43  ;;  %v702_v43 = vadd.f32 %v670_v18, %v506_v28 }
 0x146   : > { %v892_v39 = vadd.f32 %v860_v46, %v696_v45  ;;  %v429_v0 = vpop.permute.xlu1 %428 }
 0x147   : > { %v502_v35 = vmul.f32 %v4396_v12, %v429_v0 }
 0x148   : > { %v931_v3 = vadd.f32 %v4424_v48, %v892_v39 }
 0x149   : > { %v698_v5 = vadd.f32 %v666_v30, %v502_v35  ;;  %v630_v35 = vpop.permute.xlu0 %629 }
 0x14a   : > { %v434_v49 = vpop.permute.xlu1 %433  ;;  %v963_v19 = vmax.f32 %v931_v3, 0.0 }
 0x14b   : > { %v503_v2 = vmul.f32 %v4396_v12, %v434_v49 }
 0x14f   : > { %v606_v54 = vpop.permute.xlu1 %605 }
 0x150   : > { %v667_v56 = vmul.f32 %v4394_v10, %v606_v54 }
 0x152   : > { %v699_v37 = vadd.f32 %v667_v56, %v503_v2 }
 0x154   : > { %v794_v61 = vpop.permute.xlu1 %793  ;;  %v895_v63 = vadd.f32 %v863_v38, %v699_v37 }
 0x155   : > { %v861_v42 = vmul.f32 %v4398_v13, %v794_v61 }
 0x156   : > { %v934_v51 = vadd.f32 %v4424_v48, %v895_v63  ;;  %v634_v63 = vpop.permute.xlu0 %633 }
 0x157   : > { %v893_v59 = vadd.f32 %v861_v42, %v697_v44 }
 0x158   : > { %v798_v62 = vpop.permute.xlu1 %797  ;;  %v966_v16 = vmax.f32 %v934_v51, 0.0 }
 0x159   : > { %v932_v47 = vadd.f32 %v4424_v48, %v893_v59  ;;  %v862_v6 = vmul.f32 %v4398_v13, %v798_v62 }
 0x15a   : > { %v822_v62 = vpop.permute.xlu0 %821 }
 0x15b   : > { %v964_v1 = vmax.f32 %v932_v47, 0.0  ;;  %v894_v11 = vadd.f32 %v862_v6, %v698_v5  ;;  %v508_v5 = vmul.f32 %v4396_v12, %v4484_v29  ;;  %v868_v6 = vmul.f32 %v4398_v13, %v822_v62 }
 0x15d   : > { %v933_v60 = vadd.f32 %v4424_v48, %v894_v11  ;;  %v439_v20 = vpop.permute.xlu1 %438  ;;  %v1002_v15 = vpack.c.bf16 %v964_v1, %v963_v19 }
 0x15e   : > { %v504_v27 = vmul.f32 %v4396_v12, %v439_v20  ;;  %v834_v19 = vpop.permute.xlu0 %833  ;;  %v673_v20 = vmul.f32 %v4394_v10, %v630_v35 }
 0x15f   : > { %v965_v31 = vmax.f32 %v933_v60, 0.0  ;;  %3672 = vmatprep.mubr.bf16.mxu0 %v1002_v15 }
 0x161   : > { %v1003_v52 = vpack.c.bf16 %v966_v16, %v965_v31  ;;  %v871_v16 = vmul.f32 %v4398_v13, %v834_v19 }
 0x162   : > { %v610_v21 = vpop.permute.xlu1 %609 }
 0x163   : > { %3673 = vmatmul.mubr.bf16.gmra.mrb[20].mxu0 %v1003_v52  ;;  %v668_v57 = vmul.f32 %v4394_v10, %v610_v21 }
 0x165   : > { %v700_v32 = vadd.f32 %v668_v57, %v504_v27 }
 0x166   : > { %v614_v55 = vpop.permute.xlu1 %613 }
 0x167   : > { %v669_v22 = vmul.f32 %v4394_v10, %v614_v55 }
 0x169   : > { %v701_v23 = vadd.f32 %v669_v22, %v505_v53  ;;  %v674_v53 = vmul.f32 %v4394_v10, %v634_v63 }
 0x16b   : > { %v897_v14 = vadd.f32 %v865_v17, %v701_v23  ;;  %v454_v24 = vpop.permute.xlu1 %453 }
 0x16c   : > { %v507_v39 = vmul.f32 %v4396_v12, %v454_v24 }
 0x16d   : > { %v936_v9 = vadd.f32 %v4424_v48, %v897_v14 }
 0x16f   : > { %v968_v49 = vmax.f32 %v936_v9, 0.0 }
 0x170   : > { %v622_v7 = vpop.permute.xlu1 %621 }
 0x171   : > { %v671_v34 = vmul.f32 %v4394_v10, %v622_v7 }
 0x173   : > { %v703_v54 = vadd.f32 %v671_v34, %v507_v39 }
 0x175   : > { %v806_v58 = vpop.permute.xlu1 %805 }
 0x176   : > { %v864_v33 = vmul.f32 %v4398_v13, %v806_v58 }
 0x178   : > { %v896_v36 = vadd.f32 %v864_v33, %v700_v32 }
 0x179   : > { %v814_v40 = vpop.permute.xlu1 %813 }
 0x17a   : > { %v935_v46 = vadd.f32 %v4424_v48, %v896_v36  ;;  %v866_v45 = vmul.f32 %v4398_v13, %v814_v40  ;;  %v4626_v36 = vld [vmem:[%s5141_s4] ss:$0 sm:$0xff] }
 0x17c   : > { %v967_v0 = vmax.f32 %v935_v46, 0.0  ;;  %v898_v26 = vadd.f32 %v866_v45, %v702_v43 }
 0x17d   : > { %v818_v50 = vpop.permute.xlu1 %817 }
 0x17e   : > { %v867_v56 = vmul.f32 %v4398_v13, %v818_v50  ;;  %v1004_v8 = vpack.c.bf16 %v968_v49, %v967_v0  ;;  %v937_v41 = vadd.f32 %v4424_v48, %v898_v26 }
 0x180   : > { %v899_v2 = vadd.f32 %v867_v56, %v703_v54  ;;  %3676 = vmatprep.mubr.bf16.mxu0 %v1004_v8  ;;  %v969_v4 = vmax.f32 %v937_v41, 0.0 }
 0x182   : > { %v938_v37 = vadd.f32 %v4424_v48, %v899_v2  ;;  %v464_v38 = vpop.permute.xlu1 %463 }
 0x183   : > { %v509_v51 = vmul.f32 %v4396_v12, %v464_v38 }
 0x184   : > { %v970_v61 = vmax.f32 %v938_v37, 0.0 }
 0x185   : > { %v705_v21 = vadd.f32 %v673_v20, %v509_v51 }
 0x186   : > { %v1005_v30 = vpack.c.bf16 %v970_v61, %v969_v4 }
 0x187   : > { %v626_v44 = vpop.permute.xlu1 %625 }
 0x188   : > { %3677 = vmatmul.mubr.bf16.gmra.mrb[24].mxu0 %v1005_v30  ;;  %v672_v3 = vmul.f32 %v4394_v10, %v626_v44 }
 0x18a   : > { %v704_v47 = vadd.f32 %v672_v3, %v508_v5 }
 0x18c   : > { %v469_v42 = vpop.permute.xlu1 %468  ;;  %v900_v15 = vadd.f32 %v868_v6, %v704_v47 }
 0x18d   : > { %v510_v29 = vmul.f32 %v4396_v12, %v469_v42 }
 0x18e   : > { %v939_v22 = vadd.f32 %v4424_v48, %v900_v15 }
 0x18f   : > { %v706_v24 = vadd.f32 %v674_v53, %v510_v29 }
 0x190   : > { %v474_v59 = vpop.permute.xlu1 %473  ;;  %v971_v25 = vmax.f32 %v939_v22, 0.0 }
 0x191   : > { %v511_v60 = vmul.f32 %v4396_v12, %v474_v59 }
 0x195   : > { %v638_v1 = vpop.permute.xlu1 %637 }
 0x196   : > { %v675_v11 = vmul.f32 %v4394_v10, %v638_v1 }
 0x198   : > { %v707_v31 = vadd.f32 %v675_v11, %v511_v60 }
 0x19a   : > { %v826_v52 = vpop.permute.xlu1 %825  ;;  %v903_v17 = vadd.f32 %v871_v16, %v707_v31 }
 0x19b   : > { %v869_v55 = vmul.f32 %v4398_v13, %v826_v52  ;;  %v4091_v52 = vld [vmem:[%s5140_s3 + $0x80] sm:$0xff]  }
 0x19c   : > { %v942_v27 = vadd.f32 %v4424_v48, %v903_v17  ;;  %3732 = vmatprep.subr.bf16.mxu0 %v4091_v52 }
 0x19d   : > { %v901_v23 = vadd.f32 %v869_v55, %v705_v21  ;;  %v4092_v21 = vld [vmem:[%s5140_s3 + $0x88] sm:$0xff]   ;;  %3733 = vmatpush3.bf16.msra.mxu0 %v4091_v52 }
 0x19e   : > { %v830_v14 = vpop.permute.xlu1 %829  ;;  %v974_v32 = vmax.f32 %v942_v27, 0.0  ;;  %3734 = vmatprep.subr.bf16.mxu0 %v4092_v21 }
 0x19f   : > { %v940_v7 = vadd.f32 %v4424_v48, %v901_v23  ;;  %v870_v57 = vmul.f32 %v4398_v13, %v830_v14 }
 0x1a1   : > { %v972_v58 = vmax.f32 %v940_v7, 0.0  ;;  %v902_v28 = vadd.f32 %v870_v57, %v706_v24  ;;  %3735 = vmatpush3.bf16.msra.mxu0 %v4092_v21 }
 0x1a3   : > { %v941_v12 = vadd.f32 %v4424_v48, %v902_v28  ;;  %v1006_v18 = vpack.c.bf16 %v972_v58, %v971_v25 }
 0x1a5   : > { %v973_v10 = vmax.f32 %v941_v12, 0.0  ;;  %3680 = vmatprep.mubr.bf16.mxu0 %v1006_v18  ;;  %v4093_v12 = vld [vmem:[%s5140_s3 + $0x90] sm:$0xff]   ;;  %v4094_v18 = vld [vmem:[%s5140_s3 + $0x98] sm:$0xff]  }
 0x1a6   : > { %3736 = vmatprep.subr.bf16.mxu0 %v4093_v12 }
 0x1a7   : > { %v1007_v33 = vpack.c.bf16 %v974_v32, %v973_v10  ;;  %3737 = vmatpush3.bf16.msra.mxu0 %v4093_v12  ;;  %v4095_v32 = vld [vmem:[%s5140_s3 + $0xa0] sm:$0xff]   ;;  %v4096_v10 = vld [vmem:[%s5140_s3 + $0xa8] sm:$0xff]  }
 0x1a8   : > { %3738 = vmatprep.subr.bf16.mxu0 %v4094_v18 }
 0x1a9   : > { %3681 = vmatmul.mubr.bf16.gmra.mrb[28].mxu0 %v1007_v33  ;;  %v4097_v33 = vld [vmem:[%s5140_s3 + $0xb0] sm:$0xff]  }
 0x1ab   : > { %3739 = vmatpush3.bf16.msra.mxu0 %v4094_v18 }
 0x1ac   : > { %3740 = vmatprep.subr.bf16.mxu0 %v4095_v32 }
 0x1ae   : > { %v3654_v9 = vpop.f32.mrb[0].mxu0 }
 0x1af   : > { %v1103_v13 = vadd.f32 %v3654_v9, %v4626_v36  ;;  %v1094_v40 = vpop.f32.mrb[1].mxu0  ;;  %3741 = vmatpush3.bf16.msra.mxu0 %v4095_v32  ;;  %v4098_v9 = vld [vmem:[%s5140_s3 + $0xb8] sm:$0xff]  }
 0x1b0   : > { %v1095_v43 = vadd.f32 %v4626_v36, %v1094_v40  ;;  %v3655_v34 = vpop.f32.mrb[2].mxu0  ;;  %3742 = vmatprep.subr.bf16.mxu0 %v4096_v10 }
 0x1b1   : > { %v1106_v48 = vadd.f32 %v3655_v34, %v4626_v36  ;;  %v1097_v46 = vpop.f32.mrb[3].mxu0  ;;  %v1223_v39 = vmax.f32 %v1103_v13, 0.0 }
 0x1b2   : > { %v1098_v45 = vadd.f32 %v4626_v36, %v1097_v46  ;;  %v1221_v26 = vmax.f32 %v1095_v43, 0.0 }
 0x1b3   : > { %v1224_v0 = vmax.f32 %v1106_v48, 0.0  ;;  %3743 = vmatpush3.bf16.msra.mxu0 %v4096_v10 }
 0x1b4   : > { %v1222_v49 = vmax.f32 %v1098_v45, 0.0  ;;  %3744 = vmatprep.subr.bf16.mxu0 %v4097_v33 }
 0x1b5   : > { %v1272_v50 = vpack.c.bf16 %v1224_v0, %v1223_v39 }
 0x1b6   : > { %v3658_v54 = vpop.f32.mrb[4].mxu0  ;;  %v1271_v56 = vpack.c.bf16 %v1222_v49, %v1221_v26 }
 0x1b7   : > { %v1119_v8 = vadd.f32 %v3658_v54, %v4626_v36  ;;  %v1110_v41 = vpop.f32.mrb[5].mxu0  ;;  %3745 = vmatpush3.bf16.msra.mxu0 %v4097_v33 }
 0x1b8   : > { %v1111_v2 = vadd.f32 %v4626_v36, %v1110_v41  ;;  %v3659_v37 = vpop.f32.mrb[6].mxu0  ;;  %3700 = vmatprep.mubr.bf16.mxu1 %v1271_v56  ;;  %3746 = vmatprep.subr.bf16.mxu0 %v4098_v9 }
 0x1b9   : > { %v1122_v38 = vadd.f32 %v3659_v37, %v4626_v36  ;;  %v1113_v4 = vpop.f32.mrb[7].mxu0  ;;  %3701 = vmatmul.mubr.bf16.vlgmr.msra.gmra.mrb[0].mxu1 %v1272_v50  ;;  %v1227_v30 = vmax.f32 %v1119_v8, 0.0 }
 0x1ba   : > { %v1114_v61 = vadd.f32 %v4626_v36, %v1113_v4  ;;  %v1225_v35 = vmax.f32 %v1111_v2, 0.0 }
 0x1bb   : > { %v1228_v44 = vmax.f32 %v1122_v38, 0.0  ;;  %3747 = vmatpush3.bf16.msra.mxu0 %v4098_v9 }
 0x1bc   : > { %v1226_v42 = vmax.f32 %v1114_v61, 0.0 }
 0x1bd   : > { %v1274_v63 = vpack.c.bf16 %v1228_v44, %v1227_v30 }
 0x1be   : > { %v1273_v59 = vpack.c.bf16 %v1226_v42, %v1225_v35 }
 0x1c0   : > { %3704 = vmatprep.mubr.bf16.mxu1 %v1273_v59 }
 0x1c1   : > { %3705 = vmatmul.mubr.bf16.gmra.mrb[4].mxu1 %v1274_v63 }
 0x1db   : > { %v3662_v3 = vpop.f32.mrb[8].mxu0 }
 0x1dc   : > { %v1135_v62 = vadd.f32 %v3662_v3, %v4626_v36  ;;  %v1126_v5 = vpop.f32.mrb[9].mxu0 }
 0x1dd   : > { %v1127_v47 = vadd.f32 %v4626_v36, %v1126_v5  ;;  %v3663_v6 = vpop.f32.mrb[10].mxu0 }
 0x1de   : > { %v1138_v1 = vadd.f32 %v3663_v6, %v4626_v36  ;;  %v1129_v11 = vpop.f32.mrb[11].mxu0  ;;  %v1231_v51 = vmax.f32 %v1135_v62, 0.0 }
 0x1df   : > { %v1130_v19 = vadd.f32 %v4626_v36, %v1129_v11  ;;  %v1229_v20 = vmax.f32 %v1127_v47, 0.0 }
 0x1e0   : > { %v1232_v60 = vmax.f32 %v1138_v1, 0.0 }
 0x1e1   : > { %v1230_v15 = vmax.f32 %v1130_v19, 0.0 }
 0x1e2   : > { %v1276_v31 = vpack.c.bf16 %v1232_v60, %v1231_v51 }
 0x1e3   : > { %v1275_v16 = vpack.c.bf16 %v1230_v15, %v1229_v20 }
 0x1e5   : > { %3708 = vmatprep.mubr.bf16.mxu1 %v1275_v16 }
 0x1e6   : > { %3709 = vmatmul.mubr.bf16.gmra.mrb[8].mxu1 %v1276_v31 }
 0x1f0   : > { %v3666_v29 = vpop.f32.mrb[12].mxu0 }
 0x1f1   : > { %v1151_v55 = vadd.f32 %v3666_v29, %v4626_v36  ;;  %v1142_v53 = vpop.f32.mrb[13].mxu0 }
 0x1f2   : > { %v1143_v22 = vadd.f32 %v4626_v36, %v1142_v53  ;;  %v3667_v17 = vpop.f32.mrb[14].mxu0 }
 0x1f3   : > { %v1154_v23 = vadd.f32 %v3667_v17, %v4626_v36  ;;  %v1145_v14 = vpop.f32.mrb[15].mxu0  ;;  %v1235_v7 = vmax.f32 %v1151_v55, 0.0 }
 0x1f4   : > { %v1146_v24 = vadd.f32 %v4626_v36, %v1145_v14  ;;  %v1233_v25 = vmax.f32 %v1143_v22, 0.0 }
 0x1f5   : > { %v1236_v57 = vmax.f32 %v1154_v23, 0.0 }
 0x1f6   : > { %v1234_v27 = vmax.f32 %v1146_v24, 0.0 }
 0x1f7   : > { %v1278_v58 = vpack.c.bf16 %v1236_v57, %v1235_v7 }
 0x1f8   : > { %v1277_v28 = vpack.c.bf16 %v1234_v27, %v1233_v25 }
 0x1fa   : > { %3712 = vmatprep.mubr.bf16.mxu1 %v1277_v28  ;;  %v4687_v28 = vld [vmem:[%s5141_s4 + $0x1] ss:$0 sm:$0xff] }
 0x1fb   : > { %3713 = vmatmul.mubr.bf16.gmra.mrb[12].mxu1 %v1278_v58 }
 0x215   : > { %v3670_v13 = vpop.f32.mrb[16].mxu0 }
 0x216   : > { %v1167_v40 = vadd.f32 %v3670_v13, %v4626_v36  ;;  %v1158_v43 = vpop.f32.mrb[17].mxu0 }
 0x217   : > { %v1159_v34 = vadd.f32 %v4626_v36, %v1158_v43  ;;  %v3671_v48 = vpop.f32.mrb[18].mxu0 }
 0x218   : > { %v1170_v46 = vadd.f32 %v3671_v48, %v4626_v36  ;;  %v1161_v45 = vpop.f32.mrb[19].mxu0  ;;  %v1239_v0 = vmax.f32 %v1167_v40, 0.0 }
 0x219   : > { %v1162_v39 = vadd.f32 %v4626_v36, %v1161_v45  ;;  %v1237_v49 = vmax.f32 %v1159_v34, 0.0 }
 0x21a   : > { %v1240_v26 = vmax.f32 %v1170_v46, 0.0 }
 0x21b   : > { %v1238_v50 = vmax.f32 %v1162_v39, 0.0 }
 0x21c   : > { %v1280_v54 = vpack.c.bf16 %v1240_v26, %v1239_v0 }
 0x21d   : > { %v1279_v56 = vpack.c.bf16 %v1238_v50, %v1237_v49 }
 0x21f   : > { %3716 = vmatprep.mubr.bf16.mxu1 %v1279_v56 }
 0x220   : > { %3717 = vmatmul.mubr.bf16.gmra.mrb[16].mxu1 %v1280_v54 }
 0x236   : > { %v3674_v8 = vpop.f32.mrb[20].mxu0 }
 0x237   : > { %v1183_v41 = vadd.f32 %v3674_v8, %v4626_v36  ;;  %v1174_v2 = vpop.f32.mrb[21].mxu0 }
 0x238   : > { %v1175_v37 = vadd.f32 %v4626_v36, %v1174_v2  ;;  %v3675_v38 = vpop.f32.mrb[22].mxu0 }
 0x239   : > { %v1186_v4 = vadd.f32 %v3675_v38, %v4626_v36  ;;  %v1177_v61 = vpop.f32.mrb[23].mxu0  ;;  %v1243_v44 = vmax.f32 %v1183_v41, 0.0 }
 0x23a   : > { %v1178_v30 = vadd.f32 %v4626_v36, %v1177_v61  ;;  %v1241_v42 = vmax.f32 %v1175_v37, 0.0 }
 0x23b   : > { %v1244_v35 = vmax.f32 %v1186_v4, 0.0 }
 0x23c   : > { %v1242_v63 = vmax.f32 %v1178_v30, 0.0 }
 0x23d   : > { %v1282_v59 = vpack.c.bf16 %v1244_v35, %v1243_v44 }
 0x23e   : > { %v1281_v3 = vpack.c.bf16 %v1242_v63, %v1241_v42 }
 0x240   : > { %3720 = vmatprep.mubr.bf16.mxu1 %v1281_v3 }
 0x241   : > { %3721 = vmatmul.mubr.bf16.gmra.mrb[20].mxu1 %v1282_v59 }
 0x25b   : > { %v3678_v62 = vpop.f32.mrb[24].mxu0 }
 0x25c   : > { %v1199_v5 = vadd.f32 %v3678_v62, %v4626_v36  ;;  %v1190_v47 = vpop.f32.mrb[25].mxu0 }
 0x25d   : > { %v1191_v6 = vadd.f32 %v4626_v36, %v1190_v47  ;;  %v3679_v1 = vpop.f32.mrb[26].mxu0 }
 0x25e   : > { %v1202_v11 = vadd.f32 %v3679_v1, %v4626_v36  ;;  %v1193_v19 = vpop.f32.mrb[27].mxu0  ;;  %v1247_v60 = vmax.f32 %v1199_v5, 0.0 }
 0x25f   : > { %v1194_v51 = vadd.f32 %v4626_v36, %v1193_v19  ;;  %v1245_v15 = vmax.f32 %v1191_v6, 0.0 }
 0x260   : > { %v1248_v20 = vmax.f32 %v1202_v11, 0.0 }
 0x261   : > { %v1246_v31 = vmax.f32 %v1194_v51, 0.0  ;;  %v4099_v51 = vld [vmem:[%s5140_s3 + $0xc0] sm:$0xff]  }
 0x262   : > { %v1284_v16 = vpack.c.bf16 %v1248_v20, %v1247_v60  ;;  %v4100_v60 = vld [vmem:[%s5140_s3 + $0xc8] sm:$0xff]   ;;  %3780 = vmatprep.subr.bf16.mxu1 %v4099_v51 }
 0x263   : > { %v1283_v52 = vpack.c.bf16 %v1246_v31, %v1245_v15  ;;  %3781 = vmatpush3.bf16.msra.mxu1 %v4099_v51 }
 0x264   : > { %3782 = vmatprep.subr.bf16.mxu1 %v4100_v60 }
 0x265   : > { %3724 = vmatprep.mubr.bf16.mxu1 %v1283_v52 }
 0x266   : > { %3725 = vmatmul.mubr.bf16.gmra.mrb[24].mxu1 %v1284_v16 }
 0x267   : > { %3783 = vmatpush3.bf16.msra.mxu1 %v4100_v60 }
 0x27c   : > { %v3682_v21 = vpop.f32.mrb[28].mxu0 }
 0x27d   : > { %v1215_v29 = vadd.f32 %v3682_v21, %v4626_v36  ;;  %v1206_v55 = vpop.f32.mrb[29].mxu0 }
 0x27e   : > { %v1207_v53 = vadd.f32 %v4626_v36, %v1206_v55  ;;  %v3683_v22 = vpop.f32.mrb[30].mxu0 }
 0x27f   : > { %v1218_v17 = vadd.f32 %v3683_v22, %v4626_v36  ;;  %v1209_v23 = vpop.f32.mrb[31].mxu0  ;;  %v1251_v24 = vmax.f32 %v1215_v29, 0.0 }
 0x280   : > { %v1210_v14 = vadd.f32 %v4626_v36, %v1209_v23  ;;  %v1249_v57 = vmax.f32 %v1207_v53, 0.0 }
 0x281   : > { %v1252_v7 = vmax.f32 %v1218_v17, 0.0 }
 0x282   : > { %v1250_v25 = vmax.f32 %v1210_v14, 0.0 }
 0x283   : > { %v1286_v27 = vpack.c.bf16 %v1252_v7, %v1251_v24  ;;  %v4101_v7 = vld [vmem:[%s5140_s3 + $0xd0] sm:$0xff]  }
 0x284   : > { %v1285_v58 = vpack.c.bf16 %v1250_v25, %v1249_v57  ;;  %3784 = vmatprep.subr.bf16.mxu1 %v4101_v7  ;;  %v4102_v57 = vld [vmem:[%s5140_s3 + $0xd8] sm:$0xff]   ;;  %v4103_v25 = vld [vmem:[%s5140_s3 + $0xe0] sm:$0xff]  }
 0x285   : > { %3785 = vmatpush3.bf16.msra.mxu1 %v4101_v7 }
 0x286   : > { %3728 = vmatprep.mubr.bf16.mxu1 %v1285_v58  ;;  %3786 = vmatprep.subr.bf16.mxu1 %v4102_v57  ;;  %v4105_v58 = vld [vmem:[%s5140_s3 + $0xf0] sm:$0xff]  }
 0x287   : > { %3729 = vmatmul.mubr.bf16.gmra.mrb[28].mxu1 %v1286_v27  ;;  %v4104_v27 = vld [vmem:[%s5140_s3 + $0xe8] sm:$0xff]  }
 0x289   : > { %3787 = vmatpush3.bf16.msra.mxu1 %v4102_v57 }
 0x28a   : > { %3788 = vmatprep.subr.bf16.mxu1 %v4103_v25 }
 0x28c   : > { %v3702_v12 = vpop.f32.mrb[0].mxu1 }
 0x28d   : > { %v1382_v18 = vadd.f32 %v3702_v12, %v4687_v28  ;;  %v1373_v32 = vpop.f32.mrb[1].mxu1  ;;  %3789 = vmatpush3.bf16.msra.mxu1 %v4103_v25  ;;  %v4106_v12 = vld [vmem:[%s5140_s3 + $0xf8] sm:$0xff]  }
 0x28e   : > { %v1374_v10 = vadd.f32 %v4687_v28, %v1373_v32  ;;  %v3703_v36 = vpop.f32.mrb[2].mxu1  ;;  %3790 = vmatprep.subr.bf16.mxu1 %v4104_v27 }
 0x28f   : > { %v1385_v33 = vadd.f32 %v3703_v36, %v4687_v28  ;;  %v1376_v9 = vpop.f32.mrb[3].mxu1  ;;  %v1502_v40 = vmax.f32 %v1382_v18, 0.0 }
 0x290   : > { %v1377_v13 = vadd.f32 %v4687_v28, %v1376_v9  ;;  %v1500_v34 = vmax.f32 %v1374_v10, 0.0 }
 0x291   : > { %v1503_v43 = vmax.f32 %v1385_v33, 0.0  ;;  %3791 = vmatpush3.bf16.msra.mxu1 %v4104_v27 }
 0x292   : > { %v1501_v48 = vmax.f32 %v1377_v13, 0.0  ;;  %3792 = vmatprep.subr.bf16.mxu1 %v4105_v58 }
 0x293   : > { %v1551_v46 = vpack.c.bf16 %v1503_v43, %v1502_v40 }
 0x294   : > { %v1550_v45 = vpack.c.bf16 %v1501_v48, %v1500_v34  ;;  %v3706_v39 = vpop.f32.mrb[4].mxu1 }
 0x295   : > { %v1398_v0 = vadd.f32 %v3706_v39, %v4687_v28  ;;  %v1389_v26 = vpop.f32.mrb[5].mxu1  ;;  %3793 = vmatpush3.bf16.msra.mxu1 %v4105_v58 }
 0x296   : > { %v1390_v49 = vadd.f32 %v4687_v28, %v1389_v26  ;;  %v3707_v50 = vpop.f32.mrb[6].mxu1  ;;  %3748 = vmatprep.mubr.bf16.mxu0 %v1550_v45  ;;  %3794 = vmatprep.subr.bf16.mxu1 %v4106_v12 }
 0x297   : > { %v1401_v54 = vadd.f32 %v3707_v50, %v4687_v28  ;;  %v1392_v56 = vpop.f32.mrb[7].mxu1  ;;  %3749 = vmatmul.mubr.bf16.vlgmr.msra.gmra.mrb[32].mxu0 %v1551_v46  ;;  %v1506_v41 = vmax.f32 %v1398_v0, 0.0 }
 0x298   : > { %v1393_v8 = vadd.f32 %v4687_v28, %v1392_v56  ;;  %v1504_v37 = vmax.f32 %v1390_v49, 0.0 }
 0x299   : > { %v1507_v2 = vmax.f32 %v1401_v54, 0.0  ;;  %3795 = vmatpush3.bf16.msra.mxu1 %v4106_v12 }
 0x29a   : > { %v1505_v38 = vmax.f32 %v1393_v8, 0.0 }
 0x29b   : > { %v1553_v4 = vpack.c.bf16 %v1507_v2, %v1506_v41 }
 0x29c   : > { %v1552_v61 = vpack.c.bf16 %v1505_v38, %v1504_v37 }
 0x29e   : > { %3752 = vmatprep.mubr.bf16.mxu0 %v1552_v61 }
 0x29f   : > { %3753 = vmatmul.mubr.bf16.gmra.mrb[36].mxu0 %v1553_v4 }
 0x2b9   : > { %v3710_v30 = vpop.f32.mrb[8].mxu1 }
 0x2ba   : > { %v1414_v44 = vadd.f32 %v3710_v30, %v4687_v28  ;;  %v1405_v35 = vpop.f32.mrb[9].mxu1 }
 0x2bb   : > { %v1406_v42 = vadd.f32 %v4687_v28, %v1405_v35  ;;  %v3711_v63 = vpop.f32.mrb[10].mxu1 }
 0x2bc   : > { %v1417_v59 = vadd.f32 %v3711_v63, %v4687_v28  ;;  %v1408_v3 = vpop.f32.mrb[11].mxu1  ;;  %v1510_v5 = vmax.f32 %v1414_v44, 0.0 }
 0x2bd   : > { %v1409_v62 = vadd.f32 %v4687_v28, %v1408_v3  ;;  %v1508_v6 = vmax.f32 %v1406_v42, 0.0 }
 0x2be   : > { %v1511_v47 = vmax.f32 %v1417_v59, 0.0 }
 0x2bf   : > { %v1509_v1 = vmax.f32 %v1409_v62, 0.0 }
 0x2c0   : > { %v1555_v11 = vpack.c.bf16 %v1511_v47, %v1510_v5 }
 0x2c1   : > { %v1554_v19 = vpack.c.bf16 %v1509_v1, %v1508_v6 }
 0x2c3   : > { %3756 = vmatprep.mubr.bf16.mxu0 %v1554_v19 }
 0x2c4   : > { %3757 = vmatmul.mubr.bf16.gmra.mrb[40].mxu0 %v1555_v11 }
 0x2ce   : > { %v3714_v20 = vpop.f32.mrb[12].mxu1 }
 0x2cf   : > { %v1430_v15 = vadd.f32 %v3714_v20, %v4687_v28  ;;  %v1421_v31 = vpop.f32.mrb[13].mxu1 }
 0x2d0   : > { %v1422_v16 = vadd.f32 %v4687_v28, %v1421_v31  ;;  %v3715_v52 = vpop.f32.mrb[14].mxu1 }
 0x2d1   : > { %v1433_v21 = vadd.f32 %v3715_v52, %v4687_v28  ;;  %v1424_v29 = vpop.f32.mrb[15].mxu1  ;;  %v1514_v53 = vmax.f32 %v1430_v15, 0.0 }
 0x2d2   : > { %v1425_v55 = vadd.f32 %v4687_v28, %v1424_v29  ;;  %v1512_v17 = vmax.f32 %v1422_v16, 0.0 }
 0x2d3   : > { %v1515_v22 = vmax.f32 %v1433_v21, 0.0 }
 0x2d4   : > { %v1513_v23 = vmax.f32 %v1425_v55, 0.0 }
 0x2d5   : > { %v1557_v14 = vpack.c.bf16 %v1515_v22, %v1514_v53 }
 0x2d6   : > { %v1556_v24 = vpack.c.bf16 %v1513_v23, %v1512_v17 }
 0x2d8   : > { %3760 = vmatprep.mubr.bf16.mxu0 %v1556_v24  ;;  %v4748_v24 = vld [vmem:[%s5141_s4 + $0x2] ss:$0 sm:$0xff] }
 0x2d9   : > { %3761 = vmatmul.mubr.bf16.gmra.mrb[44].mxu0 %v1557_v14 }
 0x2f3   : > { %v3718_v18 = vpop.f32.mrb[16].mxu1 }
 0x2f4   : > { %v1446_v32 = vadd.f32 %v3718_v18, %v4687_v28  ;;  %v1437_v10 = vpop.f32.mrb[17].mxu1 }
 0x2f5   : > { %v1438_v36 = vadd.f32 %v4687_v28, %v1437_v10  ;;  %v3719_v33 = vpop.f32.mrb[18].mxu1 }
 0x2f6   : > { %v1449_v9 = vadd.f32 %v3719_v33, %v4687_v28  ;;  %v1440_v13 = vpop.f32.mrb[19].mxu1  ;;  %v1518_v43 = vmax.f32 %v1446_v32, 0.0 }
 0x2f7   : > { %v1441_v40 = vadd.f32 %v4687_v28, %v1440_v13  ;;  %v1516_v48 = vmax.f32 %v1438_v36, 0.0 }
 0x2f8   : > { %v1519_v34 = vmax.f32 %v1449_v9, 0.0 }
 0x2f9   : > { %v1517_v46 = vmax.f32 %v1441_v40, 0.0 }
 0x2fa   : > { %v1559_v45 = vpack.c.bf16 %v1519_v34, %v1518_v43 }
 0x2fb   : > { %v1558_v39 = vpack.c.bf16 %v1517_v46, %v1516_v48 }
 0x2fd   : > { %3764 = vmatprep.mubr.bf16.mxu0 %v1558_v39 }
 0x2fe   : > { %3765 = vmatmul.mubr.bf16.gmra.mrb[48].mxu0 %v1559_v45 }
 0x314   : > { %v3722_v0 = vpop.f32.mrb[20].mxu1 }
 0x315   : > { %v1462_v26 = vadd.f32 %v3722_v0, %v4687_v28  ;;  %v1453_v49 = vpop.f32.mrb[21].mxu1 }
 0x316   : > { %v1454_v50 = vadd.f32 %v4687_v28, %v1453_v49  ;;  %v3723_v54 = vpop.f32.mrb[22].mxu1 }
 0x317   : > { %v1465_v56 = vadd.f32 %v3723_v54, %v4687_v28  ;;  %v1456_v8 = vpop.f32.mrb[23].mxu1  ;;  %v1522_v2 = vmax.f32 %v1462_v26, 0.0 }
 0x318   : > { %v1457_v41 = vadd.f32 %v4687_v28, %v1456_v8  ;;  %v1520_v38 = vmax.f32 %v1454_v50, 0.0 }
 0x319   : > { %v1523_v37 = vmax.f32 %v1465_v56, 0.0 }
 0x31a   : > { %v1521_v4 = vmax.f32 %v1457_v41, 0.0 }
 0x31b   : > { %v1561_v61 = vpack.c.bf16 %v1523_v37, %v1522_v2 }
 0x31c   : > { %v1560_v30 = vpack.c.bf16 %v1521_v4, %v1520_v38 }
 0x31e   : > { %3768 = vmatprep.mubr.bf16.mxu0 %v1560_v30 }
 0x31f   : > { %3769 = vmatmul.mubr.bf16.gmra.mrb[52].mxu0 %v1561_v61 }
 0x339   : > { %v3726_v44 = vpop.f32.mrb[24].mxu1 }
 0x33a   : > { %v1478_v35 = vadd.f32 %v3726_v44, %v4687_v28  ;;  %v1469_v42 = vpop.f32.mrb[25].mxu1 }
 0x33b   : > { %v1470_v63 = vadd.f32 %v4687_v28, %v1469_v42  ;;  %v3727_v59 = vpop.f32.mrb[26].mxu1 }
 0x33c   : > { %v1481_v3 = vadd.f32 %v3727_v59, %v4687_v28  ;;  %v1472_v62 = vpop.f32.mrb[27].mxu1  ;;  %v1526_v47 = vmax.f32 %v1478_v35, 0.0 }
 0x33d   : > { %v1473_v5 = vadd.f32 %v4687_v28, %v1472_v62  ;;  %v1524_v1 = vmax.f32 %v1470_v63, 0.0 }
 0x33e   : > { %v1527_v6 = vmax.f32 %v1481_v3, 0.0 }
 0x33f   : > { %v1525_v11 = vmax.f32 %v1473_v5, 0.0  ;;  %v4107_v5 = vld [vmem:[%s5140_s3 + $0x100] sm:$0xff]  }
 0x340   : > { %v1563_v19 = vpack.c.bf16 %v1527_v6, %v1526_v47  ;;  %v4108_v47 = vld [vmem:[%s5140_s3 + $0x108] sm:$0xff]   ;;  %3828 = vmatprep.subr.bf16.mxu0 %v4107_v5 }
 0x341   : > { %v1562_v51 = vpack.c.bf16 %v1525_v11, %v1524_v1  ;;  %3829 = vmatpush3.bf16.msra.mxu0 %v4107_v5 }
 0x342   : > { %3830 = vmatprep.subr.bf16.mxu0 %v4108_v47 }
 0x343   : > { %3772 = vmatprep.mubr.bf16.mxu0 %v1562_v51 }
 0x344   : > { %3773 = vmatmul.mubr.bf16.gmra.mrb[56].mxu0 %v1563_v19 }
 0x345   : > { %3831 = vmatpush3.bf16.msra.mxu0 %v4108_v47 }
 0x35a   : > { %v3730_v60 = vpop.f32.mrb[28].mxu1 }
 0x35b   : > { %v1494_v20 = vadd.f32 %v3730_v60, %v4687_v28  ;;  %v1485_v15 = vpop.f32.mrb[29].mxu1 }
 0x35c   : > { %v1486_v31 = vadd.f32 %v4687_v28, %v1485_v15  ;;  %v3731_v16 = vpop.f32.mrb[30].mxu1 }
 0x35d   : > { %v1497_v52 = vadd.f32 %v3731_v16, %v4687_v28  ;;  %v1488_v21 = vpop.f32.mrb[31].mxu1  ;;  %v1530_v55 = vmax.f32 %v1494_v20, 0.0 }
 0x35e   : > { %v1489_v29 = vadd.f32 %v4687_v28, %v1488_v21  ;;  %v1528_v22 = vmax.f32 %v1486_v31, 0.0 }
 0x35f   : > { %v1531_v53 = vmax.f32 %v1497_v52, 0.0 }
 0x360   : > { %v1529_v17 = vmax.f32 %v1489_v29, 0.0 }
 0x361   : > { %v1565_v23 = vpack.c.bf16 %v1531_v53, %v1530_v55  ;;  %v4109_v53 = vld [vmem:[%s5140_s3 + $0x110] sm:$0xff]  }
 0x362   : > { %v1564_v14 = vpack.c.bf16 %v1529_v17, %v1528_v22  ;;  %3832 = vmatprep.subr.bf16.mxu0 %v4109_v53  ;;  %v4110_v22 = vld [vmem:[%s5140_s3 + $0x118] sm:$0xff]   ;;  %v4111_v17 = vld [vmem:[%s5140_s3 + $0x120] sm:$0xff]  }
 0x363   : > { %3833 = vmatpush3.bf16.msra.mxu0 %v4109_v53 }
 0x364   : > { %3776 = vmatprep.mubr.bf16.mxu0 %v1564_v14  ;;  %3834 = vmatprep.subr.bf16.mxu0 %v4110_v22  ;;  %v4113_v14 = vld [vmem:[%s5140_s3 + $0x130] sm:$0xff]  }
 0x365   : > { %3777 = vmatmul.mubr.bf16.gmra.mrb[60].mxu0 %v1565_v23  ;;  %v4112_v23 = vld [vmem:[%s5140_s3 + $0x128] sm:$0xff]  }
 0x367   : > { %3835 = vmatpush3.bf16.msra.mxu0 %v4110_v22 }
 0x368   : > { %3836 = vmatprep.subr.bf16.mxu0 %v4111_v17 }
 0x36a   : > { %v3750_v7 = vpop.f32.mrb[32].mxu0 }
 0x36b   : > { %v1661_v57 = vadd.f32 %v3750_v7, %v4748_v24  ;;  %v1652_v25 = vpop.f32.mrb[33].mxu0  ;;  %3837 = vmatpush3.bf16.msra.mxu0 %v4111_v17  ;;  %v4114_v7 = vld [vmem:[%s5140_s3 + $0x138] sm:$0xff]  }
 0x36c   : > { %v1653_v27 = vadd.f32 %v4748_v24, %v1652_v25  ;;  %v3751_v28 = vpop.f32.mrb[34].mxu0  ;;  %3838 = vmatprep.subr.bf16.mxu0 %v4112_v23 }
 0x36d   : > { %v1664_v58 = vadd.f32 %v3751_v28, %v4748_v24  ;;  %v1655_v12 = vpop.f32.mrb[35].mxu0  ;;  %v1781_v32 = vmax.f32 %v1661_v57, 0.0 }
 0x36e   : > { %v1656_v18 = vadd.f32 %v4748_v24, %v1655_v12  ;;  %v1779_v36 = vmax.f32 %v1653_v27, 0.0 }
 0x36f   : > { %v1782_v10 = vmax.f32 %v1664_v58, 0.0  ;;  %3839 = vmatpush3.bf16.msra.mxu0 %v4112_v23 }
 0x370   : > { %v1780_v33 = vmax.f32 %v1656_v18, 0.0  ;;  %3840 = vmatprep.subr.bf16.mxu0 %v4113_v14 }
 0x371   : > { %v1830_v9 = vpack.c.bf16 %v1782_v10, %v1781_v32 }
 0x372   : > { %v1829_v13 = vpack.c.bf16 %v1780_v33, %v1779_v36  ;;  %v3754_v40 = vpop.f32.mrb[36].mxu0 }
 0x373   : > { %v1677_v43 = vadd.f32 %v3754_v40, %v4748_v24  ;;  %v1668_v34 = vpop.f32.mrb[37].mxu0  ;;  %3841 = vmatpush3.bf16.msra.mxu0 %v4113_v14 }
 0x374   : > { %v1669_v48 = vadd.f32 %v4748_v24, %v1668_v34  ;;  %v3755_v46 = vpop.f32.mrb[38].mxu0  ;;  %3796 = vmatprep.mubr.bf16.mxu1 %v1829_v13  ;;  %3842 = vmatprep.subr.bf16.mxu0 %v4114_v7 }
 0x375   : > { %v1680_v45 = vadd.f32 %v3755_v46, %v4748_v24  ;;  %v1671_v39 = vpop.f32.mrb[39].mxu0  ;;  %3797 = vmatmul.mubr.bf16.vlgmr.msra.gmra.mrb[32].mxu1 %v1830_v9  ;;  %v1785_v26 = vmax.f32 %v1677_v43, 0.0 }
 0x376   : > { %v1672_v0 = vadd.f32 %v4748_v24, %v1671_v39  ;;  %v1783_v50 = vmax.f32 %v1669_v48, 0.0 }
 0x377   : > { %v1786_v49 = vmax.f32 %v1680_v45, 0.0  ;;  %3843 = vmatpush3.bf16.msra.mxu0 %v4114_v7 }
 0x378   : > { %v1784_v54 = vmax.f32 %v1672_v0, 0.0 }
 0x379   : > { %v1832_v56 = vpack.c.bf16 %v1786_v49, %v1785_v26 }
 0x37a   : > { %v1831_v8 = vpack.c.bf16 %v1784_v54, %v1783_v50 }
 0x37c   : > { %3800 = vmatprep.mubr.bf16.mxu1 %v1831_v8 }
 0x37d   : > { %3801 = vmatmul.mubr.bf16.gmra.mrb[36].mxu1 %v1832_v56 }
 0x397   : > { %v3758_v41 = vpop.f32.mrb[40].mxu0 }
 0x398   : > { %v1693_v2 = vadd.f32 %v3758_v41, %v4748_v24  ;;  %v1684_v37 = vpop.f32.mrb[41].mxu0 }
 0x399   : > { %v1685_v38 = vadd.f32 %v4748_v24, %v1684_v37  ;;  %v3759_v4 = vpop.f32.mrb[42].mxu0 }
 0x39a   : > { %v1696_v61 = vadd.f32 %v3759_v4, %v4748_v24  ;;  %v1687_v30 = vpop.f32.mrb[43].mxu0  ;;  %v1789_v35 = vmax.f32 %v1693_v2, 0.0 }
 0x39b   : > { %v1688_v44 = vadd.f32 %v4748_v24, %v1687_v30  ;;  %v1787_v63 = vmax.f32 %v1685_v38, 0.0 }
 0x39c   : > { %v1790_v42 = vmax.f32 %v1696_v61, 0.0 }
 0x39d   : > { %v1788_v59 = vmax.f32 %v1688_v44, 0.0 }
 0x39e   : > { %v1834_v3 = vpack.c.bf16 %v1790_v42, %v1789_v35 }
 0x39f   : > { %v1833_v62 = vpack.c.bf16 %v1788_v59, %v1787_v63 }
 0x3a1   : > { %3804 = vmatprep.mubr.bf16.mxu1 %v1833_v62 }
 0x3a2   : > { %3805 = vmatmul.mubr.bf16.gmra.mrb[40].mxu1 %v1834_v3 }
 0x3ac   : > { %v3762_v6 = vpop.f32.mrb[44].mxu0 }
 0x3ad   : > { %v1709_v1 = vadd.f32 %v3762_v6, %v4748_v24  ;;  %v1700_v11 = vpop.f32.mrb[45].mxu0 }
 0x3ae   : > { %v1701_v19 = vadd.f32 %v4748_v24, %v1700_v11  ;;  %v3763_v51 = vpop.f32.mrb[46].mxu0 }
 0x3af   : > { %v1712_v60 = vadd.f32 %v3763_v51, %v4748_v24  ;;  %v1703_v20 = vpop.f32.mrb[47].mxu0  ;;  %v1793_v31 = vmax.f32 %v1709_v1, 0.0 }
 0x3b0   : > { %v1704_v15 = vadd.f32 %v4748_v24, %v1703_v20  ;;  %v1791_v52 = vmax.f32 %v1701_v19, 0.0 }
 0x3b1   : > { %v1794_v16 = vmax.f32 %v1712_v60, 0.0 }
 0x3b2   : > { %v1792_v21 = vmax.f32 %v1704_v15, 0.0 }
 0x3b3   : > { %v1836_v29 = vpack.c.bf16 %v1794_v16, %v1793_v31 }
 0x3b4   : > { %v1835_v55 = vpack.c.bf16 %v1792_v21, %v1791_v52 }
 0x3b6   : > { %3808 = vmatprep.mubr.bf16.mxu1 %v1835_v55  ;;  %v4809_v55 = vld [vmem:[%s5141_s4 + $0x3] ss:$0 sm:$0xff] }
 0x3b7   : > { %3809 = vmatmul.mubr.bf16.gmra.mrb[44].mxu1 %v1836_v29 }
 0x3d1   : > { %v3766_v57 = vpop.f32.mrb[48].mxu0 }
 0x3d2   : > { %v1725_v25 = vadd.f32 %v3766_v57, %v4748_v24  ;;  %v1716_v27 = vpop.f32.mrb[49].mxu0 }
 0x3d3   : > { %v1717_v28 = vadd.f32 %v4748_v24, %v1716_v27  ;;  %v3767_v58 = vpop.f32.mrb[50].mxu0 }
 0x3d4   : > { %v1728_v12 = vadd.f32 %v3767_v58, %v4748_v24  ;;  %v1719_v18 = vpop.f32.mrb[51].mxu0  ;;  %v1797_v10 = vmax.f32 %v1725_v25, 0.0 }
 0x3d5   : > { %v1720_v32 = vadd.f32 %v4748_v24, %v1719_v18  ;;  %v1795_v33 = vmax.f32 %v1717_v28, 0.0 }
 0x3d6   : > { %v1798_v36 = vmax.f32 %v1728_v12, 0.0 }
 0x3d7   : > { %v1796_v9 = vmax.f32 %v1720_v32, 0.0 }
 0x3d8   : > { %v1838_v13 = vpack.c.bf16 %v1798_v36, %v1797_v10 }
 0x3d9   : > { %v1837_v40 = vpack.c.bf16 %v1796_v9, %v1795_v33 }
 0x3db   : > { %3812 = vmatprep.mubr.bf16.mxu1 %v1837_v40 }
 0x3dc   : > { %3813 = vmatmul.mubr.bf16.gmra.mrb[48].mxu1 %v1838_v13 }
 0x3f2   : > { %v3770_v43 = vpop.f32.mrb[52].mxu0 }
 0x3f3   : > { %v1741_v34 = vadd.f32 %v3770_v43, %v4748_v24  ;;  %v1732_v48 = vpop.f32.mrb[53].mxu0 }
 0x3f4   : > { %v1733_v46 = vadd.f32 %v4748_v24, %v1732_v48  ;;  %v3771_v45 = vpop.f32.mrb[54].mxu0 }
 0x3f5   : > { %v1744_v39 = vadd.f32 %v3771_v45, %v4748_v24  ;;  %v1735_v0 = vpop.f32.mrb[55].mxu0  ;;  %v1801_v49 = vmax.f32 %v1741_v34, 0.0 }
 0x3f6   : > { %v1736_v26 = vadd.f32 %v4748_v24, %v1735_v0  ;;  %v1799_v54 = vmax.f32 %v1733_v46, 0.0 }
 0x3f7   : > { %v1802_v50 = vmax.f32 %v1744_v39, 0.0 }
 0x3f8   : > { %v1800_v56 = vmax.f32 %v1736_v26, 0.0 }
 0x3f9   : > { %v1840_v8 = vpack.c.bf16 %v1802_v50, %v1801_v49 }
 0x3fa   : > { %v1839_v41 = vpack.c.bf16 %v1800_v56, %v1799_v54 }
 0x3fc   : > { %3816 = vmatprep.mubr.bf16.mxu1 %v1839_v41 }
 0x3fd   : > { %3817 = vmatmul.mubr.bf16.gmra.mrb[52].mxu1 %v1840_v8 }
 0x417   : > { %v3774_v2 = vpop.f32.mrb[56].mxu0 }
 0x418   : > { %v1757_v37 = vadd.f32 %v3774_v2, %v4748_v24  ;;  %v1748_v38 = vpop.f32.mrb[57].mxu0 }
 0x419   : > { %v1749_v4 = vadd.f32 %v4748_v24, %v1748_v38  ;;  %v3775_v61 = vpop.f32.mrb[58].mxu0 }
 0x41a   : > { %v1760_v30 = vadd.f32 %v3775_v61, %v4748_v24  ;;  %v1751_v44 = vpop.f32.mrb[59].mxu0  ;;  %v1805_v42 = vmax.f32 %v1757_v37, 0.0 }
 0x41b   : > { %v1752_v35 = vadd.f32 %v4748_v24, %v1751_v44  ;;  %v1803_v59 = vmax.f32 %v1749_v4, 0.0 }
 0x41c   : > { %v1806_v63 = vmax.f32 %v1760_v30, 0.0 }
 0x41d   : > { %v1804_v3 = vmax.f32 %v1752_v35, 0.0  ;;  %v4115_v35 = vld [vmem:[%s5140_s3 + $0x140] sm:$0xff]  }
 0x41e   : > { %v1842_v62 = vpack.c.bf16 %v1806_v63, %v1805_v42  ;;  %v4116_v42 = vld [vmem:[%s5140_s3 + $0x148] sm:$0xff]   ;;  %3876 = vmatprep.subr.bf16.mxu1 %v4115_v35 }
 0x41f   : > { %v1841_v5 = vpack.c.bf16 %v1804_v3, %v1803_v59  ;;  %3877 = vmatpush3.bf16.msra.mxu1 %v4115_v35 }
 0x420   : > { %3878 = vmatprep.subr.bf16.mxu1 %v4116_v42 }
 0x421   : > { %3820 = vmatprep.mubr.bf16.mxu1 %v1841_v5 }
 0x422   : > { %3821 = vmatmul.mubr.bf16.gmra.mrb[56].mxu1 %v1842_v62 }
 0x423   : > { %3879 = vmatpush3.bf16.msra.mxu1 %v4116_v42 }
 0x438   : > { %v3778_v47 = vpop.f32.mrb[60].mxu0 }
 0x439   : > { %v1773_v6 = vadd.f32 %v3778_v47, %v4748_v24  ;;  %v1764_v1 = vpop.f32.mrb[61].mxu0 }
 0x43a   : > { %v1765_v11 = vadd.f32 %v4748_v24, %v1764_v1  ;;  %v3779_v19 = vpop.f32.mrb[62].mxu0 }
 0x43b   : > { %v1776_v51 = vadd.f32 %v3779_v19, %v4748_v24  ;;  %v1767_v60 = vpop.f32.mrb[63].mxu0  ;;  %v1809_v15 = vmax.f32 %v1773_v6, 0.0 }
 0x43c   : > { %v1768_v20 = vadd.f32 %v4748_v24, %v1767_v60  ;;  %v1807_v16 = vmax.f32 %v1765_v11, 0.0 }
 0x43d   : > { %v1810_v31 = vmax.f32 %v1776_v51, 0.0 }
 0x43e   : > { %v1808_v52 = vmax.f32 %v1768_v20, 0.0 }
 0x43f   : > { %v1844_v21 = vpack.c.bf16 %v1810_v31, %v1809_v15  ;;  %v4117_v31 = vld [vmem:[%s5140_s3 + $0x150] sm:$0xff]  }
 0x440   : > { %v1843_v29 = vpack.c.bf16 %v1808_v52, %v1807_v16  ;;  %3880 = vmatprep.subr.bf16.mxu1 %v4117_v31  ;;  %v4118_v16 = vld [vmem:[%s5140_s3 + $0x158] sm:$0xff]   ;;  %v4119_v52 = vld [vmem:[%s5140_s3 + $0x160] sm:$0xff]  }
 0x441   : > { %3881 = vmatpush3.bf16.msra.mxu1 %v4117_v31 }
 0x442   : > { %3824 = vmatprep.mubr.bf16.mxu1 %v1843_v29  ;;  %3882 = vmatprep.subr.bf16.mxu1 %v4118_v16  ;;  %v4121_v29 = vld [vmem:[%s5140_s3 + $0x170] sm:$0xff]  }
 0x443   : > { %3825 = vmatmul.mubr.bf16.gmra.mrb[60].mxu1 %v1844_v21  ;;  %v4120_v21 = vld [vmem:[%s5140_s3 + $0x168] sm:$0xff]  }
 0x445   : > { %3883 = vmatpush3.bf16.msra.mxu1 %v4118_v16 }
 0x446   : > { %3884 = vmatprep.subr.bf16.mxu1 %v4119_v52 }
 0x448   : > { %v3798_v53 = vpop.f32.mrb[32].mxu1 }
 0x449   : > { %v1940_v22 = vadd.f32 %v3798_v53, %v4809_v55  ;;  %v1931_v17 = vpop.f32.mrb[33].mxu1  ;;  %3885 = vmatpush3.bf16.msra.mxu1 %v4119_v52  ;;  %v4122_v53 = vld [vmem:[%s5140_s3 + $0x178] sm:$0xff]  }
 0x44a   : > { %v1932_v23 = vadd.f32 %v4809_v55, %v1931_v17  ;;  %v3799_v24 = vpop.f32.mrb[34].mxu1  ;;  %3886 = vmatprep.subr.bf16.mxu1 %v4120_v21 }
 0x44b   : > { %v1943_v14 = vadd.f32 %v3799_v24, %v4809_v55  ;;  %v1934_v7 = vpop.f32.mrb[35].mxu1  ;;  %v2060_v25 = vmax.f32 %v1940_v22, 0.0 }
 0x44c   : > { %v1935_v57 = vadd.f32 %v4809_v55, %v1934_v7  ;;  %v2058_v28 = vmax.f32 %v1932_v23, 0.0 }
 0x44d   : > { %v2061_v27 = vmax.f32 %v1943_v14, 0.0  ;;  %3887 = vmatpush3.bf16.msra.mxu1 %v4120_v21 }
 0x44e   : > { %v2059_v58 = vmax.f32 %v1935_v57, 0.0  ;;  %3888 = vmatprep.subr.bf16.mxu1 %v4121_v29 }
 0x44f   : > { %v2109_v12 = vpack.c.bf16 %v2061_v27, %v2060_v25 }
 0x450   : > { %v2108_v18 = vpack.c.bf16 %v2059_v58, %v2058_v28  ;;  %v3802_v32 = vpop.f32.mrb[36].mxu1 }
 0x451   : > { %v1956_v10 = vadd.f32 %v3802_v32, %v4809_v55  ;;  %v1947_v36 = vpop.f32.mrb[37].mxu1  ;;  %3889 = vmatpush3.bf16.msra.mxu1 %v4121_v29 }
 0x452   : > { %v1948_v33 = vadd.f32 %v4809_v55, %v1947_v36  ;;  %v3803_v9 = vpop.f32.mrb[38].mxu1  ;;  %3844 = vmatprep.mubr.bf16.mxu0 %v2108_v18  ;;  %3890 = vmatprep.subr.bf16.mxu1 %v4122_v53 }
 0x453   : > { %v1959_v13 = vadd.f32 %v3803_v9, %v4809_v55  ;;  %v1950_v40 = vpop.f32.mrb[39].mxu1  ;;  %3845 = vmatmul.mubr.bf16.vlgmr.msra.gmra.mrb[64].mxu0 %v2109_v12  ;;  %v2064_v34 = vmax.f32 %v1956_v10, 0.0 }
 0x454   : > { %v1951_v43 = vadd.f32 %v4809_v55, %v1950_v40  ;;  %v2062_v46 = vmax.f32 %v1948_v33, 0.0 }
 0x455   : > { %v2065_v48 = vmax.f32 %v1959_v13, 0.0  ;;  %3891 = vmatpush3.bf16.msra.mxu1 %v4122_v53 }
 0x456   : > { %v2063_v45 = vmax.f32 %v1951_v43, 0.0 }
 0x457   : > { %v2111_v39 = vpack.c.bf16 %v2065_v48, %v2064_v34 }
 0x458   : > { %v2110_v0 = vpack.c.bf16 %v2063_v45, %v2062_v46 }
 0x45a   : > { %3848 = vmatprep.mubr.bf16.mxu0 %v2110_v0 }
 0x45b   : > { %3849 = vmatmul.mubr.bf16.gmra.mrb[68].mxu0 %v2111_v39 }
 0x475   : > { %v3806_v26 = vpop.f32.mrb[40].mxu1 }
 0x476   : > { %v1972_v49 = vadd.f32 %v3806_v26, %v4809_v55  ;;  %v1963_v50 = vpop.f32.mrb[41].mxu1 }
 0x477   : > { %v1964_v54 = vadd.f32 %v4809_v55, %v1963_v50  ;;  %v3807_v56 = vpop.f32.mrb[42].mxu1 }
 0x478   : > { %v1975_v8 = vadd.f32 %v3807_v56, %v4809_v55  ;;  %v1966_v41 = vpop.f32.mrb[43].mxu1  ;;  %v2068_v37 = vmax.f32 %v1972_v49, 0.0 }
 0x479   : > { %v1967_v2 = vadd.f32 %v4809_v55, %v1966_v41  ;;  %v2066_v4 = vmax.f32 %v1964_v54, 0.0 }
 0x47a   : > { %v2069_v38 = vmax.f32 %v1975_v8, 0.0 }
 0x47b   : > { %v2067_v61 = vmax.f32 %v1967_v2, 0.0 }
 0x47c   : > { %v2113_v30 = vpack.c.bf16 %v2069_v38, %v2068_v37 }
 0x47d   : > { %v2112_v44 = vpack.c.bf16 %v2067_v61, %v2066_v4 }
 0x47f   : > { %3852 = vmatprep.mubr.bf16.mxu0 %v2112_v44 }
 0x480   : > { %3853 = vmatmul.mubr.bf16.gmra.mrb[72].mxu0 %v2113_v30 }
 0x48a   : > { %v3810_v63 = vpop.f32.mrb[44].mxu1 }
 0x48b   : > { %v1988_v59 = vadd.f32 %v3810_v63, %v4809_v55  ;;  %v1979_v3 = vpop.f32.mrb[45].mxu1 }
 0x48c   : > { %v1980_v62 = vadd.f32 %v4809_v55, %v1979_v3  ;;  %v3811_v5 = vpop.f32.mrb[46].mxu1 }
 0x48d   : > { %v1991_v47 = vadd.f32 %v3811_v5, %v4809_v55  ;;  %v1982_v6 = vpop.f32.mrb[47].mxu1  ;;  %v2072_v11 = vmax.f32 %v1988_v59, 0.0 }
 0x48e   : > { %v1983_v1 = vadd.f32 %v4809_v55, %v1982_v6  ;;  %v2070_v51 = vmax.f32 %v1980_v62, 0.0 }
 0x48f   : > { %v2073_v19 = vmax.f32 %v1991_v47, 0.0 }
 0x490   : > { %v2071_v60 = vmax.f32 %v1983_v1, 0.0 }
 0x491   : > { %v2115_v20 = vpack.c.bf16 %v2073_v19, %v2072_v11 }
 0x492   : > { %v2114_v15 = vpack.c.bf16 %v2071_v60, %v2070_v51 }
 0x494   : > { %3856 = vmatprep.mubr.bf16.mxu0 %v2114_v15  ;;  %v4870_v15 = vld [vmem:[%s5141_s4 + $0x4] ss:$0 sm:$0xff] }
 0x495   : > { %3857 = vmatmul.mubr.bf16.gmra.mrb[76].mxu0 %v2115_v20 }
 0x4af   : > { %v3814_v22 = vpop.f32.mrb[48].mxu1 }
 0x4b0   : > { %v2004_v17 = vadd.f32 %v3814_v22, %v4809_v55  ;;  %v1995_v23 = vpop.f32.mrb[49].mxu1 }
 0x4b1   : > { %v1996_v24 = vadd.f32 %v4809_v55, %v1995_v23  ;;  %v3815_v14 = vpop.f32.mrb[50].mxu1 }
 0x4b2   : > { %v2007_v7 = vadd.f32 %v3815_v14, %v4809_v55  ;;  %v1998_v57 = vpop.f32.mrb[51].mxu1  ;;  %v2076_v27 = vmax.f32 %v2004_v17, 0.0 }
 0x4b3   : > { %v1999_v25 = vadd.f32 %v4809_v55, %v1998_v57  ;;  %v2074_v58 = vmax.f32 %v1996_v24, 0.0 }
 0x4b4   : > { %v2077_v28 = vmax.f32 %v2007_v7, 0.0 }
 0x4b5   : > { %v2075_v12 = vmax.f32 %v1999_v25, 0.0 }
 0x4b6   : > { %v2117_v18 = vpack.c.bf16 %v2077_v28, %v2076_v27 }
 0x4b7   : > { %v2116_v32 = vpack.c.bf16 %v2075_v12, %v2074_v58 }
 0x4b9   : > { %3860 = vmatprep.mubr.bf16.mxu0 %v2116_v32 }
 0x4ba   : > { %3861 = vmatmul.mubr.bf16.gmra.mrb[80].mxu0 %v2117_v18 }
 0x4d0   : > { %v3818_v10 = vpop.f32.mrb[52].mxu1 }
 0x4d1   : > { %v2020_v36 = vadd.f32 %v3818_v10, %v4809_v55  ;;  %v2011_v33 = vpop.f32.mrb[53].mxu1 }
 0x4d2   : > { %v2012_v9 = vadd.f32 %v4809_v55, %v2011_v33  ;;  %v3819_v13 = vpop.f32.mrb[54].mxu1 }
 0x4d3   : > { %v2023_v40 = vadd.f32 %v3819_v13, %v4809_v55  ;;  %v2014_v43 = vpop.f32.mrb[55].mxu1  ;;  %v2080_v48 = vmax.f32 %v2020_v36, 0.0 }
 0x4d4   : > { %v2015_v34 = vadd.f32 %v4809_v55, %v2014_v43  ;;  %v2078_v45 = vmax.f32 %v2012_v9, 0.0 }
 0x4d5   : > { %v2081_v46 = vmax.f32 %v2023_v40, 0.0 }
 0x4d6   : > { %v2079_v39 = vmax.f32 %v2015_v34, 0.0 }
 0x4d7   : > { %v2119_v0 = vpack.c.bf16 %v2081_v46, %v2080_v48 }
 0x4d8   : > { %v2118_v26 = vpack.c.bf16 %v2079_v39, %v2078_v45 }
 0x4da   : > { %3864 = vmatprep.mubr.bf16.mxu0 %v2118_v26 }
 0x4db   : > { %3865 = vmatmul.mubr.bf16.gmra.mrb[84].mxu0 %v2119_v0 }
 0x4f5   : > { %v3822_v49 = vpop.f32.mrb[56].mxu1 }
 0x4f6   : > { %v2036_v50 = vadd.f32 %v3822_v49, %v4809_v55  ;;  %v2027_v54 = vpop.f32.mrb[57].mxu1 }
 0x4f7   : > { %v2028_v56 = vadd.f32 %v4809_v55, %v2027_v54  ;;  %v3823_v8 = vpop.f32.mrb[58].mxu1 }
 0x4f8   : > { %v2039_v41 = vadd.f32 %v3823_v8, %v4809_v55  ;;  %v2030_v2 = vpop.f32.mrb[59].mxu1  ;;  %v2084_v38 = vmax.f32 %v2036_v50, 0.0 }
 0x4f9   : > { %v2031_v37 = vadd.f32 %v4809_v55, %v2030_v2  ;;  %v2082_v61 = vmax.f32 %v2028_v56, 0.0 }
 0x4fa   : > { %v2085_v4 = vmax.f32 %v2039_v41, 0.0 }
 0x4fb   : > { %v2083_v30 = vmax.f32 %v2031_v37, 0.0  ;;  %v4123_v37 = vld [vmem:[%s5140_s3 + $0x180] sm:$0xff]  }
 0x4fc   : > { %v2121_v44 = vpack.c.bf16 %v2085_v4, %v2084_v38  ;;  %v4124_v38 = vld [vmem:[%s5140_s3 + $0x188] sm:$0xff]   ;;  %3924 = vmatprep.subr.bf16.mxu0 %v4123_v37 }
 0x4fd   : > { %v2120_v35 = vpack.c.bf16 %v2083_v30, %v2082_v61  ;;  %3925 = vmatpush3.bf16.msra.mxu0 %v4123_v37 }
 0x4fe   : > { %3926 = vmatprep.subr.bf16.mxu0 %v4124_v38 }
 0x4ff   : > { %3868 = vmatprep.mubr.bf16.mxu0 %v2120_v35 }
 0x500   : > { %3869 = vmatmul.mubr.bf16.gmra.mrb[88].mxu0 %v2121_v44 }
 0x501   : > { %3927 = vmatpush3.bf16.msra.mxu0 %v4124_v38 }
 0x516   : > { %v3826_v42 = vpop.f32.mrb[60].mxu1 }
 0x517   : > { %v2052_v63 = vadd.f32 %v3826_v42, %v4809_v55  ;;  %v2043_v59 = vpop.f32.mrb[61].mxu1 }
 0x518   : > { %v2044_v3 = vadd.f32 %v4809_v55, %v2043_v59  ;;  %v3827_v62 = vpop.f32.mrb[62].mxu1 }
 0x519   : > { %v2055_v5 = vadd.f32 %v3827_v62, %v4809_v55  ;;  %v2046_v47 = vpop.f32.mrb[63].mxu1  ;;  %v2088_v1 = vmax.f32 %v2052_v63, 0.0 }
 0x51a   : > { %v2047_v6 = vadd.f32 %v4809_v55, %v2046_v47  ;;  %v2086_v19 = vmax.f32 %v2044_v3, 0.0 }
 0x51b   : > { %v2089_v11 = vmax.f32 %v2055_v5, 0.0 }
 0x51c   : > { %v2087_v51 = vmax.f32 %v2047_v6, 0.0 }
 0x51d   : > { %v2123_v60 = vpack.c.bf16 %v2089_v11, %v2088_v1  ;;  %v4125_v11 = vld [vmem:[%s5140_s3 + $0x190] sm:$0xff]  }
 0x51e   : > { %v2122_v20 = vpack.c.bf16 %v2087_v51, %v2086_v19  ;;  %3928 = vmatprep.subr.bf16.mxu0 %v4125_v11  ;;  %v4126_v19 = vld [vmem:[%s5140_s3 + $0x198] sm:$0xff]   ;;  %v4127_v51 = vld [vmem:[%s5140_s3 + $0x1a0] sm:$0xff]  }
 0x51f   : > { %3929 = vmatpush3.bf16.msra.mxu0 %v4125_v11 }
 0x520   : > { %3872 = vmatprep.mubr.bf16.mxu0 %v2122_v20  ;;  %3930 = vmatprep.subr.bf16.mxu0 %v4126_v19  ;;  %v4129_v20 = vld [vmem:[%s5140_s3 + $0x1b0] sm:$0xff]  }
 0x521   : > { %3873 = vmatmul.mubr.bf16.gmra.mrb[92].mxu0 %v2123_v60  ;;  %v4128_v60 = vld [vmem:[%s5140_s3 + $0x1a8] sm:$0xff]  }
 0x523   : > { %3931 = vmatpush3.bf16.msra.mxu0 %v4126_v19 }
 0x524   : > { %3932 = vmatprep.subr.bf16.mxu0 %v4127_v51 }
 0x526   : > { %v3846_v31 = vpop.f32.mrb[64].mxu0 }
 0x527   : > { %v2219_v16 = vadd.f32 %v3846_v31, %v4870_v15  ;;  %v2210_v52 = vpop.f32.mrb[65].mxu0  ;;  %3933 = vmatpush3.bf16.msra.mxu0 %v4127_v51  ;;  %v4130_v31 = vld [vmem:[%s5140_s3 + $0x1b8] sm:$0xff]  }
 0x528   : > { %v2211_v21 = vadd.f32 %v4870_v15, %v2210_v52  ;;  %v3847_v55 = vpop.f32.mrb[66].mxu0  ;;  %3934 = vmatprep.subr.bf16.mxu0 %v4128_v60 }
 0x529   : > { %v2222_v29 = vadd.f32 %v3847_v55, %v4870_v15  ;;  %v2213_v53 = vpop.f32.mrb[67].mxu0  ;;  %v2339_v17 = vmax.f32 %v2219_v16, 0.0 }
 0x52a   : > { %v2214_v22 = vadd.f32 %v4870_v15, %v2213_v53  ;;  %v2337_v24 = vmax.f32 %v2211_v21, 0.0 }
 0x52b   : > { %v2340_v23 = vmax.f32 %v2222_v29, 0.0  ;;  %3935 = vmatpush3.bf16.msra.mxu0 %v4128_v60 }
 0x52c   : > { %v2338_v14 = vmax.f32 %v2214_v22, 0.0  ;;  %3936 = vmatprep.subr.bf16.mxu0 %v4129_v20 }
 0x52d   : > { %v2388_v7 = vpack.c.bf16 %v2340_v23, %v2339_v17 }
 0x52e   : > { %v2387_v57 = vpack.c.bf16 %v2338_v14, %v2337_v24  ;;  %v3850_v25 = vpop.f32.mrb[68].mxu0 }
 0x52f   : > { %v2235_v27 = vadd.f32 %v3850_v25, %v4870_v15  ;;  %v2226_v28 = vpop.f32.mrb[69].mxu0  ;;  %3937 = vmatpush3.bf16.msra.mxu0 %v4129_v20 }
 0x530   : > { %v2227_v58 = vadd.f32 %v4870_v15, %v2226_v28  ;;  %v3851_v12 = vpop.f32.mrb[70].mxu0  ;;  %3892 = vmatprep.mubr.bf16.mxu1 %v2387_v57  ;;  %3938 = vmatprep.subr.bf16.mxu0 %v4130_v31 }
 0x531   : > { %v2238_v18 = vadd.f32 %v3851_v12, %v4870_v15  ;;  %v2229_v32 = vpop.f32.mrb[71].mxu0  ;;  %3893 = vmatmul.mubr.bf16.vlgmr.msra.gmra.mrb[64].mxu1 %v2388_v7  ;;  %v2343_v36 = vmax.f32 %v2235_v27, 0.0 }
 0x532   : > { %v2230_v10 = vadd.f32 %v4870_v15, %v2229_v32  ;;  %v2341_v9 = vmax.f32 %v2227_v58, 0.0 }
 0x533   : > { %v2344_v33 = vmax.f32 %v2238_v18, 0.0  ;;  %3939 = vmatpush3.bf16.msra.mxu0 %v4130_v31 }
 0x534   : > { %v2342_v13 = vmax.f32 %v2230_v10, 0.0 }
 0x535   : > { %v2390_v40 = vpack.c.bf16 %v2344_v33, %v2343_v36 }
 0x536   : > { %v2389_v43 = vpack.c.bf16 %v2342_v13, %v2341_v9 }
 0x538   : > { %3896 = vmatprep.mubr.bf16.mxu1 %v2389_v43 }
 0x539   : > { %3897 = vmatmul.mubr.bf16.gmra.mrb[68].mxu1 %v2390_v40 }
 0x553   : > { %v3854_v34 = vpop.f32.mrb[72].mxu0 }
 0x554   : > { %v2251_v48 = vadd.f32 %v3854_v34, %v4870_v15  ;;  %v2242_v46 = vpop.f32.mrb[73].mxu0 }
 0x555   : > { %v2243_v45 = vadd.f32 %v4870_v15, %v2242_v46  ;;  %v3855_v39 = vpop.f32.mrb[74].mxu0 }
 0x556   : > { %v2254_v0 = vadd.f32 %v3855_v39, %v4870_v15  ;;  %v2245_v26 = vpop.f32.mrb[75].mxu0  ;;  %v2347_v50 = vmax.f32 %v2251_v48, 0.0 }
 0x557   : > { %v2246_v49 = vadd.f32 %v4870_v15, %v2245_v26  ;;  %v2345_v56 = vmax.f32 %v2243_v45, 0.0 }
 0x558   : > { %v2348_v54 = vmax.f32 %v2254_v0, 0.0 }
 0x559   : > { %v2346_v8 = vmax.f32 %v2246_v49, 0.0 }
 0x55a   : > { %v2392_v41 = vpack.c.bf16 %v2348_v54, %v2347_v50 }
 0x55b   : > { %v2391_v2 = vpack.c.bf16 %v2346_v8, %v2345_v56 }
 0x55d   : > { %3900 = vmatprep.mubr.bf16.mxu1 %v2391_v2 }
 0x55e   : > { %3901 = vmatmul.mubr.bf16.gmra.mrb[72].mxu1 %v2392_v41 }
 0x568   : > { %v3858_v4 = vpop.f32.mrb[76].mxu0 }
 0x569   : > { %v2267_v61 = vadd.f32 %v3858_v4, %v4870_v15  ;;  %v2258_v30 = vpop.f32.mrb[77].mxu0 }
 0x56a   : > { %v2259_v44 = vadd.f32 %v4870_v15, %v2258_v30  ;;  %v3859_v35 = vpop.f32.mrb[78].mxu0 }
 0x56b   : > { %v2270_v42 = vadd.f32 %v3859_v35, %v4870_v15  ;;  %v2261_v63 = vpop.f32.mrb[79].mxu0  ;;  %v2351_v3 = vmax.f32 %v2267_v61, 0.0 }
 0x56c   : > { %v2262_v59 = vadd.f32 %v4870_v15, %v2261_v63  ;;  %v2349_v5 = vmax.f32 %v2259_v44, 0.0 }
 0x56d   : > { %v2352_v62 = vmax.f32 %v2270_v42, 0.0 }
 0x56e   : > { %v2350_v47 = vmax.f32 %v2262_v59, 0.0 }
 0x56f   : > { %v2394_v6 = vpack.c.bf16 %v2352_v62, %v2351_v3 }
 0x570   : > { %v2393_v1 = vpack.c.bf16 %v2350_v47, %v2349_v5 }
 0x572   : > { %3904 = vmatprep.mubr.bf16.mxu1 %v2393_v1  ;;  %v4931_v1 = vld [vmem:[%s5141_s4 + $0x5] ss:$0 sm:$0xff] }
 0x573   : > { %3905 = vmatmul.mubr.bf16.gmra.mrb[76].mxu1 %v2394_v6 }
 0x58d   : > { %v3862_v16 = vpop.f32.mrb[80].mxu0 }
 0x58e   : > { %v2283_v52 = vadd.f32 %v3862_v16, %v4870_v15  ;;  %v2274_v21 = vpop.f32.mrb[81].mxu0 }
 0x58f   : > { %v2275_v55 = vadd.f32 %v4870_v15, %v2274_v21  ;;  %v3863_v29 = vpop.f32.mrb[82].mxu0 }
 0x590   : > { %v2286_v53 = vadd.f32 %v3863_v29, %v4870_v15  ;;  %v2277_v22 = vpop.f32.mrb[83].mxu0  ;;  %v2355_v23 = vmax.f32 %v2283_v52, 0.0 }
 0x591   : > { %v2278_v17 = vadd.f32 %v4870_v15, %v2277_v22  ;;  %v2353_v14 = vmax.f32 %v2275_v55, 0.0 }
 0x592   : > { %v2356_v24 = vmax.f32 %v2286_v53, 0.0 }
 0x593   : > { %v2354_v7 = vmax.f32 %v2278_v17, 0.0 }
 0x594   : > { %v2396_v57 = vpack.c.bf16 %v2356_v24, %v2355_v23 }
 0x595   : > { %v2395_v25 = vpack.c.bf16 %v2354_v7, %v2353_v14 }
 0x597   : > { %3908 = vmatprep.mubr.bf16.mxu1 %v2395_v25 }
 0x598   : > { %3909 = vmatmul.mubr.bf16.gmra.mrb[80].mxu1 %v2396_v57 }
 0x5ae   : > { %v3866_v27 = vpop.f32.mrb[84].mxu0 }
 0x5af   : > { %v2299_v28 = vadd.f32 %v3866_v27, %v4870_v15  ;;  %v2290_v58 = vpop.f32.mrb[85].mxu0 }
 0x5b0   : > { %v2291_v12 = vadd.f32 %v4870_v15, %v2290_v58  ;;  %v3867_v18 = vpop.f32.mrb[86].mxu0 }
 0x5b1   : > { %v2302_v32 = vadd.f32 %v3867_v18, %v4870_v15  ;;  %v2293_v10 = vpop.f32.mrb[87].mxu0  ;;  %v2359_v33 = vmax.f32 %v2299_v28, 0.0 }
 0x5b2   : > { %v2294_v36 = vadd.f32 %v4870_v15, %v2293_v10  ;;  %v2357_v13 = vmax.f32 %v2291_v12, 0.0 }
 0x5b3   : > { %v2360_v9 = vmax.f32 %v2302_v32, 0.0 }
 0x5b4   : > { %v2358_v40 = vmax.f32 %v2294_v36, 0.0 }
 0x5b5   : > { %v2398_v43 = vpack.c.bf16 %v2360_v9, %v2359_v33 }
 0x5b6   : > { %v2397_v34 = vpack.c.bf16 %v2358_v40, %v2357_v13 }
 0x5b8   : > { %3912 = vmatprep.mubr.bf16.mxu1 %v2397_v34 }
 0x5b9   : > { %3913 = vmatmul.mubr.bf16.gmra.mrb[84].mxu1 %v2398_v43 }
 0x5d3   : > { %v3870_v48 = vpop.f32.mrb[88].mxu0 }
 0x5d4   : > { %v2315_v46 = vadd.f32 %v3870_v48, %v4870_v15  ;;  %v2306_v45 = vpop.f32.mrb[89].mxu0 }
 0x5d5   : > { %v2307_v39 = vadd.f32 %v4870_v15, %v2306_v45  ;;  %v3871_v0 = vpop.f32.mrb[90].mxu0 }
 0x5d6   : > { %v2318_v26 = vadd.f32 %v3871_v0, %v4870_v15  ;;  %v2309_v49 = vpop.f32.mrb[91].mxu0  ;;  %v2363_v54 = vmax.f32 %v2315_v46, 0.0 }
 0x5d7   : > { %v2310_v50 = vadd.f32 %v4870_v15, %v2309_v49  ;;  %v2361_v8 = vmax.f32 %v2307_v39, 0.0 }
 0x5d8   : > { %v2364_v56 = vmax.f32 %v2318_v26, 0.0 }
 0x5d9   : > { %v2362_v41 = vmax.f32 %v2310_v50, 0.0  ;;  %v4131_v50 = vld [vmem:[%s5142_s5] sm:$0xff]  }
 0x5da   : > { %v2400_v2 = vpack.c.bf16 %v2364_v56, %v2363_v54  ;;  %v4132_v54 = vld [vmem:[%s5142_s5 + $0x8] sm:$0xff]   ;;  %3972 = vmatprep.subr.bf16.mxu1 %v4131_v50 }
 0x5db   : > { %v2399_v37 = vpack.c.bf16 %v2362_v41, %v2361_v8  ;;  %3973 = vmatpush3.bf16.msra.mxu1 %v4131_v50 }
 0x5dc   : > { %3974 = vmatprep.subr.bf16.mxu1 %v4132_v54 }
 0x5dd   : > { %3916 = vmatprep.mubr.bf16.mxu1 %v2399_v37 }
 0x5de   : > { %3917 = vmatmul.mubr.bf16.gmra.mrb[88].mxu1 %v2400_v2 }
 0x5df   : > { %3975 = vmatpush3.bf16.msra.mxu1 %v4132_v54 }
 0x5f4   : > { %v3874_v38 = vpop.f32.mrb[92].mxu0 }
 0x5f5   : > { %v2331_v4 = vadd.f32 %v3874_v38, %v4870_v15  ;;  %v2322_v61 = vpop.f32.mrb[93].mxu0 }
 0x5f6   : > { %v2323_v30 = vadd.f32 %v4870_v15, %v2322_v61  ;;  %v3875_v44 = vpop.f32.mrb[94].mxu0 }
 0x5f7   : > { %v2334_v35 = vadd.f32 %v3875_v44, %v4870_v15  ;;  %v2325_v42 = vpop.f32.mrb[95].mxu0  ;;  %v2367_v59 = vmax.f32 %v2331_v4, 0.0 }
 0x5f8   : > { %v2326_v63 = vadd.f32 %v4870_v15, %v2325_v42  ;;  %v2365_v62 = vmax.f32 %v2323_v30, 0.0 }
 0x5f9   : > { %v2368_v3 = vmax.f32 %v2334_v35, 0.0 }
 0x5fa   : > { %v2366_v5 = vmax.f32 %v2326_v63, 0.0 }
 0x5fb   : > { %v2402_v47 = vpack.c.bf16 %v2368_v3, %v2367_v59  ;;  %v4133_v3 = vld [vmem:[%s5142_s5 + $0x10] sm:$0xff]  }
 0x5fc   : > { %v2401_v6 = vpack.c.bf16 %v2366_v5, %v2365_v62  ;;  %3976 = vmatprep.subr.bf16.mxu1 %v4133_v3  ;;  %v4134_v62 = vld [vmem:[%s5142_s5 + $0x18] sm:$0xff]   ;;  %v4135_v5 = vld [vmem:[%s5142_s5 + $0x20] sm:$0xff]  }
 0x5fd   : > { %3977 = vmatpush3.bf16.msra.mxu1 %v4133_v3 }
 0x5fe   : > { %3920 = vmatprep.mubr.bf16.mxu1 %v2401_v6  ;;  %3978 = vmatprep.subr.bf16.mxu1 %v4134_v62  ;;  %v4137_v6 = vld [vmem:[%s5142_s5 + $0x30] sm:$0xff]  }
 0x5ff   : > { %3921 = vmatmul.mubr.bf16.gmra.mrb[92].mxu1 %v2402_v47  ;;  %v4136_v47 = vld [vmem:[%s5142_s5 + $0x28] sm:$0xff]  }
 0x601   : > { %3979 = vmatpush3.bf16.msra.mxu1 %v4134_v62 }
 0x602   : > { %3980 = vmatprep.subr.bf16.mxu1 %v4135_v5 }
 0x604   : > { %v3894_v11 = vpop.f32.mrb[64].mxu1 }
 0x605   : > { %v2498_v19 = vadd.f32 %v3894_v11, %v4931_v1  ;;  %v2489_v51 = vpop.f32.mrb[65].mxu1  ;;  %3981 = vmatpush3.bf16.msra.mxu1 %v4135_v5  ;;  %v4138_v11 = vld [vmem:[%s5142_s5 + $0x38] sm:$0xff]  }
 0x606   : > { %v2490_v60 = vadd.f32 %v4931_v1, %v2489_v51  ;;  %v3895_v15 = vpop.f32.mrb[66].mxu1  ;;  %3982 = vmatprep.subr.bf16.mxu1 %v4136_v47 }
 0x607   : > { %v2501_v20 = vadd.f32 %v3895_v15, %v4931_v1  ;;  %v2492_v31 = vpop.f32.mrb[67].mxu1  ;;  %v2618_v52 = vmax.f32 %v2498_v19, 0.0 }
 0x608   : > { %v2493_v16 = vadd.f32 %v4931_v1, %v2492_v31  ;;  %v2616_v55 = vmax.f32 %v2490_v60, 0.0 }
 0x609   : > { %v2619_v21 = vmax.f32 %v2501_v20, 0.0  ;;  %3983 = vmatpush3.bf16.msra.mxu1 %v4136_v47 }
 0x60a   : > { %v2617_v29 = vmax.f32 %v2493_v16, 0.0  ;;  %3984 = vmatprep.subr.bf16.mxu1 %v4137_v6 }
 0x60b   : > { %v2667_v53 = vpack.c.bf16 %v2619_v21, %v2618_v52 }
 0x60c   : > { %v2666_v22 = vpack.c.bf16 %v2617_v29, %v2616_v55  ;;  %v3898_v17 = vpop.f32.mrb[68].mxu1 }
 0x60d   : > { %v2514_v23 = vadd.f32 %v3898_v17, %v4931_v1  ;;  %v2505_v24 = vpop.f32.mrb[69].mxu1  ;;  %3985 = vmatpush3.bf16.msra.mxu1 %v4137_v6 }
 0x60e   : > { %v2506_v14 = vadd.f32 %v4931_v1, %v2505_v24  ;;  %v3899_v7 = vpop.f32.mrb[70].mxu1  ;;  %3940 = vmatprep.mubr.bf16.mxu0 %v2666_v22  ;;  %3986 = vmatprep.subr.bf16.mxu1 %v4138_v11 }
 0x60f   : > { %v2517_v57 = vadd.f32 %v3899_v7, %v4931_v1  ;;  %v2508_v25 = vpop.f32.mrb[71].mxu1  ;;  %3941 = vmatmul.mubr.bf16.vlgmr.msra.gmra.mrb[96].mxu0 %v2667_v53  ;;  %v2622_v28 = vmax.f32 %v2514_v23, 0.0 }
 0x610   : > { %v2509_v27 = vadd.f32 %v4931_v1, %v2508_v25  ;;  %v2620_v12 = vmax.f32 %v2506_v14, 0.0 }
 0x611   : > { %v2623_v58 = vmax.f32 %v2517_v57, 0.0  ;;  %3987 = vmatpush3.bf16.msra.mxu1 %v4138_v11 }
 0x612   : > { %v2621_v18 = vmax.f32 %v2509_v27, 0.0 }
 0x613   : > { %v2669_v32 = vpack.c.bf16 %v2623_v58, %v2622_v28 }
 0x614   : > { %v2668_v10 = vpack.c.bf16 %v2621_v18, %v2620_v12 }
 0x616   : > { %3944 = vmatprep.mubr.bf16.mxu0 %v2668_v10 }
 0x617   : > { %3945 = vmatmul.mubr.bf16.gmra.mrb[100].mxu0 %v2669_v32 }
 0x631   : > { %v3902_v36 = vpop.f32.mrb[72].mxu1 }
 0x632   : > { %v2530_v33 = vadd.f32 %v3902_v36, %v4931_v1  ;;  %v2521_v9 = vpop.f32.mrb[73].mxu1 }
 0x633   : > { %v2522_v13 = vadd.f32 %v4931_v1, %v2521_v9  ;;  %v3903_v40 = vpop.f32.mrb[74].mxu1 }
 0x634   : > { %v2533_v43 = vadd.f32 %v3903_v40, %v4931_v1  ;;  %v2524_v34 = vpop.f32.mrb[75].mxu1  ;;  %v2626_v46 = vmax.f32 %v2530_v33, 0.0 }
 0x635   : > { %v2525_v48 = vadd.f32 %v4931_v1, %v2524_v34  ;;  %v2624_v39 = vmax.f32 %v2522_v13, 0.0 }
 0x636   : > { %v2627_v45 = vmax.f32 %v2533_v43, 0.0 }
 0x637   : > { %v2625_v0 = vmax.f32 %v2525_v48, 0.0 }
 0x638   : > { %v2671_v26 = vpack.c.bf16 %v2627_v45, %v2626_v46 }
 0x639   : > { %v2670_v49 = vpack.c.bf16 %v2625_v0, %v2624_v39 }
 0x63b   : > { %3948 = vmatprep.mubr.bf16.mxu0 %v2670_v49 }
 0x63c   : > { %3949 = vmatmul.mubr.bf16.gmra.mrb[104].mxu0 %v2671_v26 }
 0x646   : > { %v3906_v56 = vpop.f32.mrb[76].mxu1 }
 0x647   : > { %v2546_v8 = vadd.f32 %v3906_v56, %v4931_v1  ;;  %v2537_v41 = vpop.f32.mrb[77].mxu1 }
 0x648   : > { %v2538_v2 = vadd.f32 %v4931_v1, %v2537_v41  ;;  %v3907_v37 = vpop.f32.mrb[78].mxu1 }
 0x649   : > { %v2549_v38 = vadd.f32 %v3907_v37, %v4931_v1  ;;  %v2540_v4 = vpop.f32.mrb[79].mxu1  ;;  %v2630_v30 = vmax.f32 %v2546_v8, 0.0 }
 0x64a   : > { %v2541_v61 = vadd.f32 %v4931_v1, %v2540_v4  ;;  %v2628_v35 = vmax.f32 %v2538_v2, 0.0 }
 0x64b   : > { %v2631_v44 = vmax.f32 %v2549_v38, 0.0 }
 0x64c   : > { %v2629_v42 = vmax.f32 %v2541_v61, 0.0 }
 0x64d   : > { %v2673_v63 = vpack.c.bf16 %v2631_v44, %v2630_v30 }
 0x64e   : > { %v2672_v59 = vpack.c.bf16 %v2629_v42, %v2628_v35 }
 0x650   : > { %3952 = vmatprep.mubr.bf16.mxu0 %v2672_v59  ;;  %v4992_v59 = vld [vmem:[%s5141_s4 + $0x6] ss:$0 sm:$0xff] }
 0x651   : > { %3953 = vmatmul.mubr.bf16.gmra.mrb[108].mxu0 %v2673_v63 }
 0x66b   : > { %v3910_v19 = vpop.f32.mrb[80].mxu1 }
 0x66c   : > { %v2562_v51 = vadd.f32 %v3910_v19, %v4931_v1  ;;  %v2553_v60 = vpop.f32.mrb[81].mxu1 }
 0x66d   : > { %v2554_v15 = vadd.f32 %v4931_v1, %v2553_v60  ;;  %v3911_v20 = vpop.f32.mrb[82].mxu1 }
 0x66e   : > { %v2565_v31 = vadd.f32 %v3911_v20, %v4931_v1  ;;  %v2556_v16 = vpop.f32.mrb[83].mxu1  ;;  %v2634_v21 = vmax.f32 %v2562_v51, 0.0 }
 0x66f   : > { %v2557_v52 = vadd.f32 %v4931_v1, %v2556_v16  ;;  %v2632_v29 = vmax.f32 %v2554_v15, 0.0 }
 0x670   : > { %v2635_v55 = vmax.f32 %v2565_v31, 0.0 }
 0x671   : > { %v2633_v53 = vmax.f32 %v2557_v52, 0.0 }
 0x672   : > { %v2675_v22 = vpack.c.bf16 %v2635_v55, %v2634_v21 }
 0x673   : > { %v2674_v17 = vpack.c.bf16 %v2633_v53, %v2632_v29 }
 0x675   : > { %3956 = vmatprep.mubr.bf16.mxu0 %v2674_v17 }
 0x676   : > { %3957 = vmatmul.mubr.bf16.gmra.mrb[112].mxu0 %v2675_v22 }
 0x68c   : > { %v3914_v23 = vpop.f32.mrb[84].mxu1 }
 0x68d   : > { %v2578_v24 = vadd.f32 %v3914_v23, %v4931_v1  ;;  %v2569_v14 = vpop.f32.mrb[85].mxu1 }
 0x68e   : > { %v2570_v7 = vadd.f32 %v4931_v1, %v2569_v14  ;;  %v3915_v57 = vpop.f32.mrb[86].mxu1 }
 0x68f   : > { %v2581_v25 = vadd.f32 %v3915_v57, %v4931_v1  ;;  %v2572_v27 = vpop.f32.mrb[87].mxu1  ;;  %v2638_v58 = vmax.f32 %v2578_v24, 0.0 }
 0x690   : > { %v2573_v28 = vadd.f32 %v4931_v1, %v2572_v27  ;;  %v2636_v18 = vmax.f32 %v2570_v7, 0.0 }
 0x691   : > { %v2639_v12 = vmax.f32 %v2581_v25, 0.0 }
 0x692   : > { %v2637_v32 = vmax.f32 %v2573_v28, 0.0 }
 0x693   : > { %v2677_v10 = vpack.c.bf16 %v2639_v12, %v2638_v58 }
 0x694   : > { %v2676_v36 = vpack.c.bf16 %v2637_v32, %v2636_v18 }
 0x696   : > { %3960 = vmatprep.mubr.bf16.mxu0 %v2676_v36 }
 0x697   : > { %3961 = vmatmul.mubr.bf16.gmra.mrb[116].mxu0 %v2677_v10 }
 0x6b1   : > { %v3918_v33 = vpop.f32.mrb[88].mxu1 }
 0x6b2   : > { %v2594_v9 = vadd.f32 %v3918_v33, %v4931_v1  ;;  %v2585_v13 = vpop.f32.mrb[89].mxu1 }
 0x6b3   : > { %v2586_v40 = vadd.f32 %v4931_v1, %v2585_v13  ;;  %v3919_v43 = vpop.f32.mrb[90].mxu1 }
 0x6b4   : > { %v2597_v34 = vadd.f32 %v3919_v43, %v4931_v1  ;;  %v2588_v48 = vpop.f32.mrb[91].mxu1  ;;  %v2642_v45 = vmax.f32 %v2594_v9, 0.0 }
 0x6b5   : > { %v2589_v46 = vadd.f32 %v4931_v1, %v2588_v48  ;;  %v2640_v0 = vmax.f32 %v2586_v40, 0.0 }
 0x6b6   : > { %v2643_v39 = vmax.f32 %v2597_v34, 0.0 }
 0x6b7   : > { %v2641_v26 = vmax.f32 %v2589_v46, 0.0 }
 0x6b8   : > { %v2679_v49 = vpack.c.bf16 %v2643_v39, %v2642_v45 }
 0x6b9   : > { %v2678_v50 = vpack.c.bf16 %v2641_v26, %v2640_v0 }
 0x6bb   : > { %3964 = vmatprep.mubr.bf16.mxu0 %v2678_v50 }
 0x6bc   : > { %3965 = vmatmul.mubr.bf16.gmra.mrb[120].mxu0 %v2679_v49 }
 0x6d2   : > { %v3922_v54 = vpop.f32.mrb[92].mxu1 }
 0x6d3   : > { %v2610_v56 = vadd.f32 %v3922_v54, %v4931_v1  ;;  %v2601_v8 = vpop.f32.mrb[93].mxu1 }
 0x6d4   : > { %v2602_v41 = vadd.f32 %v4931_v1, %v2601_v8  ;;  %v3923_v2 = vpop.f32.mrb[94].mxu1 }
 0x6d5   : > { %v2613_v37 = vadd.f32 %v3923_v2, %v4931_v1  ;;  %v2604_v38 = vpop.f32.mrb[95].mxu1  ;;  %v2646_v61 = vmax.f32 %v2610_v56, 0.0 }
 0x6d6   : > { %v2605_v4 = vadd.f32 %v4931_v1, %v2604_v38  ;;  %v2644_v44 = vmax.f32 %v2602_v41, 0.0 }
 0x6d7   : > { %v2647_v30 = vmax.f32 %v2613_v37, 0.0 }
 0x6d8   : > { %v2645_v35 = vmax.f32 %v2605_v4, 0.0 }
 0x6d9   : > { %v2681_v42 = vpack.c.bf16 %v2647_v30, %v2646_v61 }
 0x6da   : > { %v2680_v63 = vpack.c.bf16 %v2645_v35, %v2644_v44 }
 0x6dc   : > { %3968 = vmatprep.mubr.bf16.mxu0 %v2680_v63 }
 0x6dd   : > { %3969 = vmatmul.mubr.bf16.gmra.mrb[124].mxu0 %v2681_v42 }
 0x6e2   : > { %v3942_v3 = vpop.f32.mrb[96].mxu0 }
 0x6e3   : > { %v2777_v62 = vadd.f32 %v3942_v3, %v4992_v59  ;;  %v2768_v5 = vpop.f32.mrb[97].mxu0 }
 0x6e4   : > { %v2769_v47 = vadd.f32 %v4992_v59, %v2768_v5  ;;  %v3943_v1 = vpop.f32.mrb[98].mxu0 }
 0x6e5   : > { %v2780_v6 = vadd.f32 %v3943_v1, %v4992_v59  ;;  %v2771_v11 = vpop.f32.mrb[99].mxu0  ;;  %v2897_v51 = vmax.f32 %v2777_v62, 0.0 }
 0x6e6   : > { %v2772_v19 = vadd.f32 %v4992_v59, %v2771_v11  ;;  %v2895_v15 = vmax.f32 %v2769_v47, 0.0 }
 0x6e7   : > { %v2898_v60 = vmax.f32 %v2780_v6, 0.0 }
 0x6e8   : > { %v2896_v20 = vmax.f32 %v2772_v19, 0.0 }
 0x6e9   : > { %v2928_v31 = vpack.c.bf16 %v2898_v60, %v2897_v51 }
 0x6ea   : > { %v2927_v16 = vpack.c.bf16 %v2896_v20, %v2895_v15  ;;  %v3946_v52 = vpop.f32.mrb[100].mxu0 }
 0x6eb   : > { %v2793_v21 = vadd.f32 %v3946_v52, %v4992_v59  ;;  %v2784_v55 = vpop.f32.mrb[101].mxu0 }
 0x6ec   : > { %v2785_v29 = vadd.f32 %v4992_v59, %v2784_v55  ;;  %v3947_v53 = vpop.f32.mrb[102].mxu0  ;;  %3988 = vmatprep.mubr.bf16.mxu1 %v2927_v16 }
 0x6ed   : > { %v2796_v22 = vadd.f32 %v3947_v53, %v4992_v59  ;;  %v2787_v17 = vpop.f32.mrb[103].mxu0  ;;  %3989 = vmatmul.mubr.bf16.vlgmr.msra.gmra.mrb[96].mxu1 %v2928_v31  ;;  %v2901_v24 = vmax.f32 %v2793_v21, 0.0 }
 0x6ee   : > { %v2788_v23 = vadd.f32 %v4992_v59, %v2787_v17  ;;  %v2899_v7 = vmax.f32 %v2785_v29, 0.0 }
 0x6ef   : > { %v2902_v14 = vmax.f32 %v2796_v22, 0.0 }
 0x6f0   : > { %v2900_v57 = vmax.f32 %v2788_v23, 0.0 }
 0x6f1   : > { %v2930_v25 = vpack.c.bf16 %v2902_v14, %v2901_v24 }
 0x6f2   : > { %v2929_v27 = vpack.c.bf16 %v2900_v57, %v2899_v7 }
 0x6f4   : > { %3992 = vmatprep.mubr.bf16.mxu1 %v2929_v27 }
 0x6f5   : > { %3993 = vmatmul.mubr.bf16.gmra.mrb[100].mxu1 %v2930_v25 }
 0x70f   : > { %v3950_v28 = vpop.f32.mrb[104].mxu0 }
 0x710   : > { %v2809_v58 = vadd.f32 %v3950_v28, %v4992_v59  ;;  %v2800_v12 = vpop.f32.mrb[105].mxu0 }
 0x711   : > { %v2801_v18 = vadd.f32 %v4992_v59, %v2800_v12  ;;  %v3951_v32 = vpop.f32.mrb[106].mxu0 }
 0x712   : > { %v2812_v10 = vadd.f32 %v3951_v32, %v4992_v59  ;;  %v2803_v36 = vpop.f32.mrb[107].mxu0  ;;  %v2905_v9 = vmax.f32 %v2809_v58, 0.0 }
 0x713   : > { %v2804_v33 = vadd.f32 %v4992_v59, %v2803_v36  ;;  %v2903_v40 = vmax.f32 %v2801_v18, 0.0 }
 0x714   : > { %v2906_v13 = vmax.f32 %v2812_v10, 0.0 }
 0x715   : > { %v2904_v43 = vmax.f32 %v2804_v33, 0.0 }
 0x716   : > { %v2932_v34 = vpack.c.bf16 %v2906_v13, %v2905_v9 }
 0x717   : > { %v2931_v48 = vpack.c.bf16 %v2904_v43, %v2903_v40 }
 0x719   : > { %3996 = vmatprep.mubr.bf16.mxu1 %v2931_v48 }
 0x71a   : > { %3997 = vmatmul.mubr.bf16.gmra.mrb[104].mxu1 %v2932_v34 }
 0x724   : > { %v3954_v46 = vpop.f32.mrb[108].mxu0 }
 0x725   : > { %v2825_v45 = vadd.f32 %v3954_v46, %v4992_v59  ;;  %v2816_v39 = vpop.f32.mrb[109].mxu0 }
 0x726   : > { %v2817_v0 = vadd.f32 %v4992_v59, %v2816_v39  ;;  %v3955_v26 = vpop.f32.mrb[110].mxu0 }
 0x727   : > { %v2828_v49 = vadd.f32 %v3955_v26, %v4992_v59  ;;  %v2819_v50 = vpop.f32.mrb[111].mxu0  ;;  %v2909_v56 = vmax.f32 %v2825_v45, 0.0 }
 0x728   : > { %v2820_v54 = vadd.f32 %v4992_v59, %v2819_v50  ;;  %v2907_v41 = vmax.f32 %v2817_v0, 0.0 }
 0x729   : > { %v2910_v8 = vmax.f32 %v2828_v49, 0.0 }
 0x72a   : > { %v2908_v2 = vmax.f32 %v2820_v54, 0.0  ;;  %v5029_v54 = vld [vmem:[%s5143_s6] ss:$0 sm:$0xff] }
 0x72b   : > { %v2934_v37 = vpack.c.bf16 %v2910_v8, %v2909_v56 }
 0x72c   : > { %v2933_v38 = vpack.c.bf16 %v2908_v2, %v2907_v41 }
 0x72e   : > { %4000 = vmatprep.mubr.bf16.mxu1 %v2933_v38 }
 0x72f   : > { %4001 = vmatmul.mubr.bf16.gmra.mrb[108].mxu1 %v2934_v37 }
 0x749   : > { %v3958_v4 = vpop.f32.mrb[112].mxu0 }
 0x74a   : > { %v2841_v61 = vadd.f32 %v3958_v4, %v4992_v59  ;;  %v2832_v30 = vpop.f32.mrb[113].mxu0 }
 0x74b   : > { %v2833_v44 = vadd.f32 %v4992_v59, %v2832_v30  ;;  %v3959_v35 = vpop.f32.mrb[114].mxu0 }
 0x74c   : > { %v2844_v42 = vadd.f32 %v3959_v35, %v4992_v59  ;;  %v2835_v63 = vpop.f32.mrb[115].mxu0  ;;  %v2913_v62 = vmax.f32 %v2841_v61, 0.0 }
 0x74d   : > { %v2836_v3 = vadd.f32 %v4992_v59, %v2835_v63  ;;  %v2911_v47 = vmax.f32 %v2833_v44, 0.0 }
 0x74e   : > { %v2914_v5 = vmax.f32 %v2844_v42, 0.0 }
 0x74f   : > { %v2912_v1 = vmax.f32 %v2836_v3, 0.0 }
 0x750   : > { %v2936_v6 = vpack.c.bf16 %v2914_v5, %v2913_v62 }
 0x751   : > { %v2935_v11 = vpack.c.bf16 %v2912_v1, %v2911_v47 }
 0x753   : > { %4004 = vmatprep.mubr.bf16.mxu1 %v2935_v11 }
 0x754   : > { %4005 = vmatmul.mubr.bf16.gmra.mrb[112].mxu1 %v2936_v6 }
 0x76a   : > { %v3962_v19 = vpop.f32.mrb[116].mxu0 }
 0x76b   : > { %v2857_v51 = vadd.f32 %v3962_v19, %v4992_v59  ;;  %v2848_v60 = vpop.f32.mrb[117].mxu0 }
 0x76c   : > { %v2849_v15 = vadd.f32 %v4992_v59, %v2848_v60  ;;  %v3963_v20 = vpop.f32.mrb[118].mxu0 }
 0x76d   : > { %v2860_v31 = vadd.f32 %v3963_v20, %v4992_v59  ;;  %v2851_v16 = vpop.f32.mrb[119].mxu0  ;;  %v2917_v21 = vmax.f32 %v2857_v51, 0.0 }
 0x76e   : > { %v2852_v52 = vadd.f32 %v4992_v59, %v2851_v16  ;;  %v2915_v29 = vmax.f32 %v2849_v15, 0.0 }
 0x76f   : > { %v2918_v55 = vmax.f32 %v2860_v31, 0.0 }
 0x770   : > { %v2916_v53 = vmax.f32 %v2852_v52, 0.0 }
 0x771   : > { %v2938_v22 = vpack.c.bf16 %v2918_v55, %v2917_v21 }
 0x772   : > { %v2937_v17 = vpack.c.bf16 %v2916_v53, %v2915_v29 }
 0x774   : > { %4008 = vmatprep.mubr.bf16.mxu1 %v2937_v17 }
 0x775   : > { %4009 = vmatmul.mubr.bf16.gmra.mrb[116].mxu1 %v2938_v22 }
 0x78f   : > { %v3966_v23 = vpop.f32.mrb[120].mxu0 }
 0x790   : > { %v2873_v24 = vadd.f32 %v3966_v23, %v4992_v59  ;;  %v2864_v14 = vpop.f32.mrb[121].mxu0 }
 0x791   : > { %v2865_v7 = vadd.f32 %v4992_v59, %v2864_v14  ;;  %v3967_v57 = vpop.f32.mrb[122].mxu0 }
 0x792   : > { %v2876_v25 = vadd.f32 %v3967_v57, %v4992_v59  ;;  %v2867_v27 = vpop.f32.mrb[123].mxu0  ;;  %v2921_v58 = vmax.f32 %v2873_v24, 0.0 }
 0x793   : > { %v2868_v28 = vadd.f32 %v4992_v59, %v2867_v27  ;;  %v2919_v18 = vmax.f32 %v2865_v7, 0.0 }
 0x794   : > { %v2922_v12 = vmax.f32 %v2876_v25, 0.0 }
 0x795   : > { %v2920_v32 = vmax.f32 %v2868_v28, 0.0 }
 0x796   : > { %v2940_v10 = vpack.c.bf16 %v2922_v12, %v2921_v58 }
 0x797   : > { %v2939_v36 = vpack.c.bf16 %v2920_v32, %v2919_v18 }
 0x799   : > { %4012 = vmatprep.mubr.bf16.mxu1 %v2939_v36 }
 0x79a   : > { %4013 = vmatmul.mubr.bf16.gmra.mrb[120].mxu1 %v2940_v10 }
 0x7b0   : > { %v3970_v33 = vpop.f32.mrb[124].mxu0 }
 0x7b1   : > { %v2889_v9 = vadd.f32 %v3970_v33, %v4992_v59  ;;  %v2880_v13 = vpop.f32.mrb[125].mxu0 }
 0x7b2   : > { %v2881_v40 = vadd.f32 %v4992_v59, %v2880_v13  ;;  %v3971_v43 = vpop.f32.mrb[126].mxu0 }
 0x7b3   : > { %v2892_v34 = vadd.f32 %v3971_v43, %v4992_v59  ;;  %v2883_v48 = vpop.f32.mrb[127].mxu0  ;;  %v2925_v45 = vmax.f32 %v2889_v9, 0.0 }
 0x7b4   : > { %v2884_v46 = vadd.f32 %v4992_v59, %v2883_v48  ;;  %v2923_v0 = vmax.f32 %v2881_v40, 0.0 }
 0x7b5   : > { %v2926_v39 = vmax.f32 %v2892_v34, 0.0 }
 0x7b6   : > { %v2924_v26 = vmax.f32 %v2884_v46, 0.0 }
 0x7b7   : > { %v2942_v49 = vpack.c.bf16 %v2926_v39, %v2925_v45 }
 0x7b8   : > { %v2941_v50 = vpack.c.bf16 %v2924_v26, %v2923_v0 }
 0x7ba   : > { %4016 = vmatprep.mubr.bf16.mxu1 %v2941_v50 }
 0x7bb   : > { %4017 = vmatmul.mubr.bf16.gmra.mrb[124].mxu1 %v2942_v49 }
 0x7c0   : > { %v3990_v59 = vpop.f32.mrb[96].mxu1 }
 0x7c1   : > { %v3057_v56 = vadd.f32 %v3990_v59, %v5029_v54  ;;  %v3048_v8 = vpop.f32.mrb[97].mxu1 }
 0x7c2   : > { %v3049_v41 = vadd.f32 %v5029_v54, %v3048_v8  ;;  %v3991_v2 = vpop.f32.mrb[98].mxu1 }
 0x7c3   : > { %3178 = vst.msk [vmem:[%s5036_s18 + $0x10] sm:$0xff] %vm3175_vm0, %v3057_v56  ;;  %v3060_v37 = vadd.f32 %v3991_v2, %v5029_v54  ;;  %v3051_v38 = vpop.f32.mrb[99].mxu1 }
 0x7c4   : > { %3176 = vst.msk [vmem:[%s5036_s18] sm:$0xff] %vm3175_vm0, %v3049_v41  ;;  %v3052_v4 = vadd.f32 %v5029_v54, %v3051_v38 }
 0x7c5   : > { %3179 = vst.msk [vmem:[%s5036_s18 + $0x18] sm:$0xff] %vm3175_vm0, %v3060_v37 }
 0x7c6   : > { %3177 = vst.msk [vmem:[%s5036_s18 + $0x8] sm:$0xff] %vm3175_vm0, %v3052_v4 }
 0x7c8   : > { %v3994_v61 = vpop.f32.mrb[100].mxu1 }
 0x7c9   : > { %v3073_v30 = vadd.f32 %v3994_v61, %v5029_v54  ;;  %v3064_v44 = vpop.f32.mrb[101].mxu1 }
 0x7ca   : > { %v3065_v35 = vadd.f32 %v5029_v54, %v3064_v44  ;;  %v3995_v42 = vpop.f32.mrb[102].mxu1 }
 0x7cb   : > { %3182 = vst.msk [vmem:[%s5036_s18 + $0x30] sm:$0xff] %vm3175_vm0, %v3073_v30  ;;  %v3076_v63 = vadd.f32 %v3995_v42, %v5029_v54  ;;  %v3067_v3 = vpop.f32.mrb[103].mxu1 }
 0x7cc   : > { %3180 = vst.msk [vmem:[%s5036_s18 + $0x20] sm:$0xff] %vm3175_vm0, %v3065_v35  ;;  %v3068_v62 = vadd.f32 %v5029_v54, %v3067_v3 }
 0x7cd   : > { %3183 = vst.msk [vmem:[%s5036_s18 + $0x38] sm:$0xff] %vm3175_vm0, %v3076_v63 }
 0x7ce   : > { %3181 = vst.msk [vmem:[%s5036_s18 + $0x28] sm:$0xff] %vm3175_vm0, %v3068_v62 }
 0x7ed   : > { %v3998_v5 = vpop.f32.mrb[104].mxu1 }
 0x7ee   : > { %v3089_v47 = vadd.f32 %v3998_v5, %v5029_v54  ;;  %v3080_v1 = vpop.f32.mrb[105].mxu1 }
 0x7ef   : > { %v3081_v6 = vadd.f32 %v5029_v54, %v3080_v1  ;;  %v3999_v11 = vpop.f32.mrb[106].mxu1 }
 0x7f0   : > { %3186 = vst.msk [vmem:[%s5036_s18 + $0x50] sm:$0xff] %vm3175_vm0, %v3089_v47  ;;  %v3092_v19 = vadd.f32 %v3999_v11, %v5029_v54  ;;  %v3083_v51 = vpop.f32.mrb[107].mxu1 }
 0x7f1   : > { %3184 = vst.msk [vmem:[%s5036_s18 + $0x40] sm:$0xff] %vm3175_vm0, %v3081_v6  ;;  %v3084_v60 = vadd.f32 %v5029_v54, %v3083_v51 }
 0x7f2   : > { %3187 = vst.msk [vmem:[%s5036_s18 + $0x58] sm:$0xff] %vm3175_vm0, %v3092_v19 }
 0x7f3   : > { %3185 = vst.msk [vmem:[%s5036_s18 + $0x48] sm:$0xff] %vm3175_vm0, %v3084_v60 }
 0x802   : > { %v4002_v15 = vpop.f32.mrb[108].mxu1 }
 0x803   : > { %v3105_v20 = vadd.f32 %v4002_v15, %v5029_v54  ;;  %v3096_v31 = vpop.f32.mrb[109].mxu1 }
 0x804   : > { %v3097_v16 = vadd.f32 %v5029_v54, %v3096_v31  ;;  %v4003_v52 = vpop.f32.mrb[110].mxu1 }
 0x805   : > { %3190 = vst.msk [vmem:[%s5036_s18 + $0x70] sm:$0xff] %vm3175_vm0, %v3105_v20  ;;  %v3108_v21 = vadd.f32 %v4003_v52, %v5029_v54  ;;  %v3099_v55 = vpop.f32.mrb[111].mxu1 }
 0x806   : > { %3188 = vst.msk [vmem:[%s5036_s18 + $0x60] sm:$0xff] %vm3175_vm0, %v3097_v16  ;;  %v3100_v29 = vadd.f32 %v5029_v54, %v3099_v55 }
 0x807   : > { %3191 = vst.msk [vmem:[%s5036_s18 + $0x78] sm:$0xff] %vm3175_vm0, %v3108_v21 }
 0x808   : > { %3189 = vst.msk [vmem:[%s5036_s18 + $0x68] sm:$0xff] %vm3175_vm0, %v3100_v29 }
 0x827   : > { %v4006_v53 = vpop.f32.mrb[112].mxu1 }
 0x828   : > { %v3121_v22 = vadd.f32 %v4006_v53, %v5029_v54  ;;  %v3112_v17 = vpop.f32.mrb[113].mxu1 }
 0x829   : > { %v3113_v23 = vadd.f32 %v5029_v54, %v3112_v17  ;;  %v4007_v24 = vpop.f32.mrb[114].mxu1 }
 0x82a   : > { %3194 = vst.msk [vmem:[%s5036_s18 + $0x90] sm:$0xff] %vm3175_vm0, %v3121_v22  ;;  %v3124_v14 = vadd.f32 %v4007_v24, %v5029_v54  ;;  %v3115_v7 = vpop.f32.mrb[115].mxu1 }
 0x82b   : > { %3192 = vst.msk [vmem:[%s5036_s18 + $0x80] sm:$0xff] %vm3175_vm0, %v3113_v23  ;;  %v3116_v57 = vadd.f32 %v5029_v54, %v3115_v7 }
 0x82c   : > { %3195 = vst.msk [vmem:[%s5036_s18 + $0x98] sm:$0xff] %vm3175_vm0, %v3124_v14 }
 0x82d   : > { %3193 = vst.msk [vmem:[%s5036_s18 + $0x88] sm:$0xff] %vm3175_vm0, %v3116_v57 }
 0x848   : > { %v4010_v25 = vpop.f32.mrb[116].mxu1 }
 0x849   : > { %v3137_v27 = vadd.f32 %v4010_v25, %v5029_v54  ;;  %v3128_v28 = vpop.f32.mrb[117].mxu1 }
 0x84a   : > { %v3129_v58 = vadd.f32 %v5029_v54, %v3128_v28  ;;  %v4011_v12 = vpop.f32.mrb[118].mxu1 }
 0x84b   : > { %3198 = vst.msk [vmem:[%s5036_s18 + $0xb0] sm:$0xff] %vm3175_vm0, %v3137_v27  ;;  %v3140_v18 = vadd.f32 %v4011_v12, %v5029_v54  ;;  %v3131_v32 = vpop.f32.mrb[119].mxu1 }
 0x84c   : > { %3196 = vst.msk [vmem:[%s5036_s18 + $0xa0] sm:$0xff] %vm3175_vm0, %v3129_v58  ;;  %v3132_v10 = vadd.f32 %v5029_v54, %v3131_v32 }
 0x84d   : > { %3199 = vst.msk [vmem:[%s5036_s18 + $0xb8] sm:$0xff] %vm3175_vm0, %v3140_v18 }
 0x84e   : > { %3197 = vst.msk [vmem:[%s5036_s18 + $0xa8] sm:$0xff] %vm3175_vm0, %v3132_v10 }
 0x86d   : > { %v4014_v36 = vpop.f32.mrb[120].mxu1 }
 0x86e   : > { %v3153_v33 = vadd.f32 %v4014_v36, %v5029_v54  ;;  %v3144_v9 = vpop.f32.mrb[121].mxu1 }
 0x86f   : > { %v3145_v13 = vadd.f32 %v5029_v54, %v3144_v9  ;;  %v4015_v40 = vpop.f32.mrb[122].mxu1 }
 0x870   : > { %3202 = vst.msk [vmem:[%s5036_s18 + $0xd0] sm:$0xff] %vm3175_vm0, %v3153_v33  ;;  %v3156_v43 = vadd.f32 %v4015_v40, %v5029_v54  ;;  %v3147_v34 = vpop.f32.mrb[123].mxu1 }
 0x871   : > { %3200 = vst.msk [vmem:[%s5036_s18 + $0xc0] sm:$0xff] %vm3175_vm0, %v3145_v13  ;;  %v3148_v48 = vadd.f32 %v5029_v54, %v3147_v34 }
 0x872   : > { %3203 = vst.msk [vmem:[%s5036_s18 + $0xd8] sm:$0xff] %vm3175_vm0, %v3156_v43 }
 0x873   : > { %3201 = vst.msk [vmem:[%s5036_s18 + $0xc8] sm:$0xff] %vm3175_vm0, %v3148_v48 }
 0x88e   : > { %v4018_v46 = vpop.f32.mrb[124].mxu1 }
 0x88f   : > { %v3169_v45 = vadd.f32 %v4018_v46, %v5029_v54  ;;  %v3160_v39 = vpop.f32.mrb[125].mxu1 }
 0x890   : > { %v3161_v0 = vadd.f32 %v5029_v54, %v3160_v39  ;;  %v4019_v26 = vpop.f32.mrb[126].mxu1 }
 0x891   : > { %3206 = vst.msk [vmem:[%s5036_s18 + $0xf0] sm:$0xff] %vm3175_vm0, %v3169_v45  ;;  %v3172_v49 = vadd.f32 %v4019_v26, %v5029_v54  ;;  %v3163_v50 = vpop.f32.mrb[127].mxu1 }
 0x892   : > { %3204 = vst.msk [vmem:[%s5036_s18 + $0xe0] sm:$0xff] %vm3175_vm0, %v3161_v0  ;;  %v3164_v59 = vadd.f32 %v5029_v54, %v3163_v50 }
 0x893   : > { %3207 = vst.msk [vmem:[%s5036_s18 + $0xf8] sm:$0xff] %vm3175_vm0, %v3172_v49 }
 0x894   : > { %3205 = vst.msk [vmem:[%s5036_s18 + $0xe8] sm:$0xff] %vm3175_vm0, %v3164_v59 }
 0x895 PF: > { %s17_s24 = sadd.s32 1, %s4145_s24  }
 0x896   : > { %p14_p4 = scmp.ge.s32.totalorder %s17_s24, 4  }
 0x898   :  { %16 = sbr.rel (!%p14_p4) target bundleno = 1 (0x1), region = 84 }

</bundles_post_ra>
